<compile_context>
chip_gen: v6e
topology: v6e:2x2x1
jax: 0.10.0
libtpu: 0.0.40
codegen_flags: <defaults>
</compile_context>

<pallas_src>
import functools
import math

import jax
import jax.numpy as jnp
import numpy as np
from jax.experimental import pallas as pl
from jax.experimental.pallas import tpu as pltpu


def _softplus(x):
    # matches torch.nn.functional.softplus (beta=1, threshold=20); for very
    # negative x this flushes toward 0 exactly like the reference below.
    return jnp.where(x > 20.0, x, jnp.log(1.0 + jnp.exp(jnp.minimum(x, 20.0))))


def ssm_kernel(
    x_ref,      # (T, d)  T = seqs_per_block * l tokens, batch-major
    A_ref,      # (d, n)  A = -exp(A_log)
    Ainv_ref,   # (d, n)  A^{-1}
    WB_ref,     # (d, n)  make_B weight, transposed for right-multiply
    WC_ref,     # (d, n)
    Wd_ref,     # (d, d)  folded delta weight (Wdi^T @ Wd^T)
    vec_ref,    # (4, d)  packed [bB, bC, b_delta, D]
    y_ref,      # (T, d)  output
    y_scr,      # (d, T)  y accumulated column-wise, transposed once at the end
    *, seq_len, seqs_per_block,
):
    l = seq_len
    Bt = seqs_per_block
    x = x_ref[...]                       # (T, d)
    A = A_ref[...]                       # (d, n)
    Ainv = Ainv_ref[...]                 # (d, n)
    T, d = x.shape
    n = A.shape[1]
    f32 = jnp.float32

    bB = vec_ref[0:1, :]                 # (1, n)
    bC = vec_ref[1:2, :]                 # (1, n)
    bdel = vec_ref[2:3, :]               # (1, d)
    Dv = vec_ref[3:4, :]                 # (1, d)

    # ---------- token-parallel projections (MXU) ----------
    Bm = jnp.dot(x, WB_ref[...], preferred_element_type=f32) + bB          # (T, n)
    Cm = jnp.dot(x, WC_ref[...], preferred_element_type=f32) + bC          # (T, n)
    delta = _softplus(jnp.dot(x, Wd_ref[...], preferred_element_type=f32) + bdel)  # (T, d)

    # ---------- hoisted per-token (d, n) precompute, batched over T ----------
    # column-form helpers (d, T): one XLU transpose each, off the serial path;
    # 1/delta is computed token-parallel here (no divides in the scan).
    dT = delta.T                         # (d, T)
    rT = 1.0 / dT                        # (d, T)
    dxT = (delta * x).T                  # (d, T)

    # lane-replication matrix: Erep[t, t*n + nn] = 1, so
    # (colT @ Erep)[dd, t*n + nn] == col[t, dd] broadcast over the n lanes of
    # token t's block.  (For long sequences this precompute would be chunked.)
    rows = jax.lax.broadcasted_iota(jnp.int32, (T, T * n), 0)
    cols = jax.lax.broadcasted_iota(jnp.int32, (T, T * n), 1)
    Erep = ((cols >= rows * n) & (cols < rows * n + n)).astype(f32)        # (T, T*n)

    d_rep = jnp.dot(dT, Erep, preferred_element_type=f32)                  # (d, T*n)
    r_rep = jnp.dot(rT, Erep, preferred_element_type=f32)                  # (d, T*n)
    dx_rep = jnp.dot(dxT, Erep, preferred_element_type=f32)                # (d, T*n)

    ii = jax.lax.broadcasted_iota(jnp.int32, (d, n), 0)
    jj = jax.lax.broadcasted_iota(jnp.int32, (d, n), 1)
    I = (ii == jj).astype(f32)                                             # (d, n)
    A_rep = jnp.tile(A, (1, T))                                            # (d, T*n)
    I_rep = jnp.tile(I, (1, T))                                            # (d, T*n)

    # A_hat = exp(delta (x) A) for all tokens: one wide EUP pass.
    A_hat = jnp.exp(d_rep * A_rep)                                         # (d, T*n)
    # inverse(deltaA) @ (A_hat - I) == Ainv @ diag(1/delta) @ (A_hat - I):
    # single big MXU matmul over the whole token slab, then fold delta*x.
    Mdx = jnp.dot(Ainv, (A_hat - I_rep) * r_rep,
                  preferred_element_type=f32) * dx_rep                     # (d, T*n)

    # ---------- sequential scans: state in registers, fully unrolled ----------
    for bb in range(Bt):                       # independent sequences in this block
        k = jnp.zeros((d, n), f32)
        for i in range(l):
            t = bb * l + i
            a_t = A_hat[:, t * n:(t + 1) * n]                              # (d, n)
            bh_t = Mdx[:, t * n:(t + 1) * n] * Bm[t:t + 1, :]              # (d, n)
            k = a_t * k + bh_t
            # y_t[dd] = sum_n k[dd, n] * C_t[n]  (hangs off the k chain)
            y_scr[:, t:t + 1] = jnp.sum(k * Cm[t:t + 1, :], axis=-1,
                                        keepdims=True)

    # ---------- epilogue: one transpose + residual D path ----------
    y_ref[...] = y_scr[...].T + x * Dv


def ssm_forward(x, A, Ainv, WBt, WCt, W_delta, vecs, *, seqs_per_block=None):
    b, l, d = x.shape
    n = A.shape[1]
    assert n == d, "module sets latent_dim = inner_dim; kernel assumes n == d"

    if seqs_per_block is None:
        seqs_per_block = max(1, min(b, 128 // max(l, 1)))
        while b % seqs_per_block:
            seqs_per_block -= 1
    Bt = seqs_per_block
    T = Bt * l
    nblocks = b // Bt

    x2 = x.reshape(b * l, d)   # flat 2-D token slab (batch-major), fatter DMA block

    grid_spec = pltpu.PrefetchScalarGridSpec(
        num_scalar_prefetch=0,
        grid=(nblocks,),
        in_specs=[
            pl.BlockSpec((T, d), lambda i: (i, 0)),   # x tokens for this block
            pl.BlockSpec((d, n), lambda i: (0, 0)),   # A
            pl.BlockSpec((d, n), lambda i: (0, 0)),   # Ainv
            pl.BlockSpec((d, n), lambda i: (0, 0)),   # WBt
            pl.BlockSpec((d, n), lambda i: (0, 0)),   # WCt
            pl.BlockSpec((d, d), lambda i: (0, 0)),   # W_delta (folded)
            pl.BlockSpec((4, d), lambda i: (0, 0)),   # packed [bB, bC, b_delta, D]
        ],
        out_specs=pl.BlockSpec((T, d), lambda i: (i, 0)),
        scratch_shapes=[pltpu.VMEM((d, T), jnp.float32)],   # y columns
    )

    kernel = functools.partial(ssm_kernel, seq_len=l, seqs_per_block=Bt)
    y2 = pl.pallas_call(
        kernel,
        out_shape=jax.ShapeDtypeStruct((b * l, d), jnp.float32),
        grid_spec=grid_spec,
        compiler_params=pltpu.CompilerParams(
            dimension_semantics=("parallel",)),   # batch blocks are independent
    )(x2, A, Ainv, WBt, WCt, W_delta, vecs)
    return y2.reshape(b, l, d)


def ssm_reference(x, A, Ainv, WB, bB, WC, bC, Wdi, bdi, Wd, bd, Dvec):
    """Pure-JAX reference mirroring the PyTorch forward (hippo branch),
    with the original (unfused) Linear parameters."""
    b, l, d = x.shape
    n = A.shape[1]
    B = x @ WB.T + bB
    C = x @ WC.T + bC
    delta = _softplus((x @ Wdi.T + bdi) @ Wd.T + bd)               # (b, l, d)
    deltaA = delta[..., None] * A                                   # (b, l, d, n)
    A_hat = jnp.exp(deltaA)
    I = jnp.eye(n, dtype=x.dtype)
    tmp = (A_hat - I) / delta[..., None]                            # diag(1/delta) @ (A_hat - I)
    M = jnp.einsum('dk,blkn->bldn', Ainv, tmp)                      # inverse(deltaA) @ (A_hat - I)
    B_hat = M * (delta[..., None] * B[:, :, None, :]) * x[..., None]
    k = jnp.zeros((b, d, n), x.dtype)
    ys = []
    for i in range(l):
        k = A_hat[:, i] * k + B_hat[:, i]
        ys.append(jnp.einsum('bdn,bn->bd', k, C[:, i]))
    y = jnp.stack(ys, axis=1)
    return y + x * Dvec


if __name__ == "__main__":
    b, l, d = 2, 8, 32
    n = d
    dt_rank = math.ceil(d / 16)          # = 2

    key = jax.random.PRNGKey(0)
    keys = jax.random.split(key, 5)

    def linear_init(k, fan_in, fan_out):
        kw, kb = jax.random.split(k)
        bound = 1.0 / float(np.sqrt(fan_in))
        W = jax.random.uniform(kw, (fan_out, fan_in), jnp.float32, -bound, bound)
        bias = jax.random.uniform(kb, (fan_out,), jnp.float32, -bound, bound)
        return W, bias

    WB, bB = linear_init(keys[0], d, n)          # make_B
    WC, bC = linear_init(keys[1], d, n)          # make_C
    Wdi, bdi = linear_init(keys[2], d, dt_rank)  # make_delta_intermediate
    Wd, bd = linear_init(keys[3], dt_rank, d)    # make_delta
    x = jax.random.normal(keys[4], (b, l, d), jnp.float32)

    # HiPPO A as seen in forward(): A = -exp(A_log) = -(tril(P P^T) - diag(arange))
    P = jnp.sqrt(1.0 + 2.0 * jnp.arange(d, dtype=jnp.float32))
    A_inner = jnp.tril(P[:, None] * P[None, :]) - jnp.diag(jnp.arange(d, dtype=jnp.float32))
    A = -A_inner                                   # (d, n)
    Ainv = jnp.linalg.inv(A)                       # glue: replaces in-loop torch.inverse
    Dvec = jnp.ones((d,), jnp.float32)

    # kernel-friendly parameter layouts:
    #  - right-multiply transposes,
    #  - the two delta Linears folded into one (d, d) matmul (exact: no
    #    nonlinearity between them),
    #  - all bias/D vectors packed into a single (4, d) operand.
    WBt = WB.T
    WCt = WC.T
    W_delta = Wdi.T @ Wd.T                         # (d, d)
    b_delta = bdi @ Wd.T + bd                      # (d,)
    vecs = jnp.stack([bB, bC, b_delta, Dvec], axis=0)   # (4, d)

    y_kernel = jax.block_until_ready(
        ssm_forward(x, A, Ainv, WBt, WCt, W_delta, vecs))
    y_ref = jax.block_until_ready(
        ssm_reference(x, A, Ainv, WB, bB, WC, bC, Wdi, bdi, Wd, bd, Dvec))

    assert y_kernel.shape == (b, l, d)
    assert bool(jnp.all(jnp.isfinite(y_kernel)))
    np.testing.assert_allclose(np.asarray(y_kernel), np.asarray(y_ref),
                               rtol=5e-2, atol=5e-2)
    print("KERNEL_OK")
</pallas_src>

<mosaic_0001>
module attributes {stable_mosaic.version = 11 : i64} {
  func.func @ssm_kernel(%arg0: i32, %arg1: memref<16x32xf32, #tpu.memory_space<vmem>>, %arg2: memref<32x32xf32, #tpu.memory_space<vmem>>, %arg3: memref<32x32xf32, #tpu.memory_space<vmem>>, %arg4: memref<32x32xf32, #tpu.memory_space<vmem>>, %arg5: memref<32x32xf32, #tpu.memory_space<vmem>>, %arg6: memref<32x32xf32, #tpu.memory_space<vmem>>, %arg7: memref<4x32xf32, #tpu.memory_space<vmem>>, %arg8: memref<16x32xf32, #tpu.memory_space<vmem>>, %arg9: memref<32x16xf32, #tpu.memory_space<vmem>>) attributes {dimension_semantics = [#tpu.dimension_semantics<parallel>], iteration_bounds = array<i64: 1>, scalar_prefetch = 0 : i64, scratch_operands = 1 : i64, tpu.core_type = #tpu.core_type<tc>, window_params = [{transform_indices = @transform_0, window_bounds = array<i64: 16, 32>}, {pipeline_mode = #tpu.pipeline_mode<synchronous>, transform_indices = @transform_1, window_bounds = array<i64: 32, 32>}, {pipeline_mode = #tpu.pipeline_mode<synchronous>, transform_indices = @transform_2, window_bounds = array<i64: 32, 32>}, {pipeline_mode = #tpu.pipeline_mode<synchronous>, transform_indices = @transform_3, window_bounds = array<i64: 32, 32>}, {pipeline_mode = #tpu.pipeline_mode<synchronous>, transform_indices = @transform_4, window_bounds = array<i64: 32, 32>}, {pipeline_mode = #tpu.pipeline_mode<synchronous>, transform_indices = @transform_5, window_bounds = array<i64: 32, 32>}, {pipeline_mode = #tpu.pipeline_mode<synchronous>, transform_indices = @transform_6, window_bounds = array<i64: 4, 32>}, {transform_indices = @transform_7, window_bounds = array<i64: 16, 32>}]} {
    %c0 = arith.constant 0 : index
    %c0_0 = arith.constant 0 : index
    %0 = vector.load %arg1[%c0, %c0_0] : memref<16x32xf32, #tpu.memory_space<vmem>>, vector<16x32xf32>
    %c0_1 = arith.constant 0 : index
    %c0_2 = arith.constant 0 : index
    %1 = vector.load %arg2[%c0_1, %c0_2] : memref<32x32xf32, #tpu.memory_space<vmem>>, vector<32x32xf32>
    %c0_3 = arith.constant 0 : index
    %c0_4 = arith.constant 0 : index
    %2 = vector.load %arg3[%c0_3, %c0_4] : memref<32x32xf32, #tpu.memory_space<vmem>>, vector<32x32xf32>
    %c0_5 = arith.constant 0 : index
    %c0_6 = arith.constant 0 : index
    %3 = vector.load %arg7[%c0_5, %c0_6] : memref<4x32xf32, #tpu.memory_space<vmem>>, vector<1x32xf32>
    %c1 = arith.constant 1 : index
    %c0_7 = arith.constant 0 : index
    %4 = vector.load %arg7[%c1, %c0_7] : memref<4x32xf32, #tpu.memory_space<vmem>>, vector<1x32xf32>
    %c2 = arith.constant 2 : index
    %c0_8 = arith.constant 0 : index
    %5 = vector.load %arg7[%c2, %c0_8] : memref<4x32xf32, #tpu.memory_space<vmem>>, vector<1x32xf32>
    %c3 = arith.constant 3 : index
    %c0_9 = arith.constant 0 : index
    %6 = vector.load %arg7[%c3, %c0_9] : memref<4x32xf32, #tpu.memory_space<vmem>>, vector<1x32xf32>
    %c0_10 = arith.constant 0 : index
    %c0_11 = arith.constant 0 : index
    %7 = vector.load %arg4[%c0_10, %c0_11] : memref<32x32xf32, #tpu.memory_space<vmem>>, vector<32x32xf32>
    %cst = arith.constant dense<0.000000e+00> : vector<16x32xf32>
    %8 = tpu.matmul %0, %7, %cst {dimension_numbers = #tpu.dot_dimension_numbers<[1], [0], [0], [1], [0, 0, 1, 1], [], []>} : vector<16x32xf32>, vector<32x32xf32>, vector<16x32xf32> -> vector<16x32xf32>
    %9 = vector.broadcast %3 : vector<1x32xf32> to vector<16x32xf32>
    %10 = arith.addf %8, %9 : vector<16x32xf32>
    %c0_12 = arith.constant 0 : index
    %c0_13 = arith.constant 0 : index
    %11 = vector.load %arg5[%c0_12, %c0_13] : memref<32x32xf32, #tpu.memory_space<vmem>>, vector<32x32xf32>
    %cst_14 = arith.constant dense<0.000000e+00> : vector<16x32xf32>
    %12 = tpu.matmul %0, %11, %cst_14 {dimension_numbers = #tpu.dot_dimension_numbers<[1], [0], [0], [1], [0, 0, 1, 1], [], []>} : vector<16x32xf32>, vector<32x32xf32>, vector<16x32xf32> -> vector<16x32xf32>
    %13 = vector.broadcast %4 : vector<1x32xf32> to vector<16x32xf32>
    %14 = arith.addf %12, %13 : vector<16x32xf32>
    %c0_15 = arith.constant 0 : index
    %c0_16 = arith.constant 0 : index
    %15 = vector.load %arg6[%c0_15, %c0_16] : memref<32x32xf32, #tpu.memory_space<vmem>>, vector<32x32xf32>
    %cst_17 = arith.constant dense<0.000000e+00> : vector<16x32xf32>
    %16 = tpu.matmul %0, %15, %cst_17 {dimension_numbers = #tpu.dot_dimension_numbers<[1], [0], [0], [1], [0, 0, 1, 1], [], []>} : vector<16x32xf32>, vector<32x32xf32>, vector<16x32xf32> -> vector<16x32xf32>
    %17 = vector.broadcast %5 : vector<1x32xf32> to vector<16x32xf32>
    %18 = arith.addf %16, %17 : vector<16x32xf32>
    %cst_18 = arith.constant 2.000000e+01 : f32
    %19 = vector.broadcast %cst_18 : f32 to vector<16x32xf32>
    %20 = arith.cmpf ogt, %18, %19 : vector<16x32xf32>
    %cst_19 = arith.constant 2.000000e+01 : f32
    %21 = vector.broadcast %cst_19 : f32 to vector<16x32xf32>
    %22 = arith.minimumf %18, %21 : vector<16x32xf32>
    %23 = math.exp %22 : vector<16x32xf32>
    %cst_20 = arith.constant 1.000000e+00 : f32
    %24 = vector.broadcast %cst_20 : f32 to vector<16x32xf32>
    %25 = arith.addf %24, %23 : vector<16x32xf32>
    %26 = math.log %25 : vector<16x32xf32>
    %27 = arith.select %20, %18, %26 : vector<16x32xi1>, vector<16x32xf32>
    %28 = tpu.transpose %27, [1, 0] : vector<16x32xf32> -> vector<32x16xf32>
    %cst_21 = arith.constant 1.000000e+00 : f32
    %29 = vector.broadcast %cst_21 : f32 to vector<32x16xf32>
    %30 = arith.divf %29, %28 : vector<32x16xf32>
    %31 = arith.mulf %27, %0 : vector<16x32xf32>
    %32 = tpu.transpose %31, [1, 0] : vector<16x32xf32> -> vector<32x16xf32>
    %33 = tpu.iota {dimensions = array<i32: 0>} : vector<16x512xi32>
    %34 = tpu.iota {dimensions = array<i32: 1>} : vector<16x512xi32>
    %c32_i32 = arith.constant 32 : i32
    %35 = vector.broadcast %c32_i32 : i32 to vector<16x512xi32>
    %36 = arith.muli %33, %35 : vector<16x512xi32>
    %37 = arith.cmpi sge, %34, %36 : vector<16x512xi32>
    %c32_i32_22 = arith.constant 32 : i32
    %38 = vector.broadcast %c32_i32_22 : i32 to vector<16x512xi32>
    %39 = arith.muli %33, %38 : vector<16x512xi32>
    %c32_i32_23 = arith.constant 32 : i32
    %40 = vector.broadcast %c32_i32_23 : i32 to vector<16x512xi32>
    %41 = arith.addi %39, %40 : vector<16x512xi32>
    %42 = arith.cmpi slt, %34, %41 : vector<16x512xi32>
    %43 = arith.andi %37, %42 : vector<16x512xi1>
    %44 = arith.extui %43 : vector<16x512xi1> to vector<16x512xi32>
    %45 = arith.sitofp %44 : vector<16x512xi32> to vector<16x512xf32>
    %cst_24 = arith.constant dense<0.000000e+00> : vector<32x512xf32>
    %46 = tpu.matmul %28, %45, %cst_24 {dimension_numbers = #tpu.dot_dimension_numbers<[1], [0], [0], [1], [0, 0, 1, 1], [], []>} : vector<32x16xf32>, vector<16x512xf32>, vector<32x512xf32> -> vector<32x512xf32>
    %cst_25 = arith.constant dense<0.000000e+00> : vector<32x512xf32>
    %47 = tpu.matmul %30, %45, %cst_25 {dimension_numbers = #tpu.dot_dimension_numbers<[1], [0], [0], [1], [0, 0, 1, 1], [], []>} : vector<32x16xf32>, vector<16x512xf32>, vector<32x512xf32> -> vector<32x512xf32>
    %cst_26 = arith.constant dense<0.000000e+00> : vector<32x512xf32>
    %48 = tpu.matmul %32, %45, %cst_26 {dimension_numbers = #tpu.dot_dimension_numbers<[1], [0], [0], [1], [0, 0, 1, 1], [], []>} : vector<32x16xf32>, vector<16x512xf32>, vector<32x512xf32> -> vector<32x512xf32>
    %49 = tpu.iota {dimensions = array<i32: 0>} : vector<32x32xi32>
    %50 = tpu.iota {dimensions = array<i32: 1>} : vector<32x32xi32>
    %51 = arith.cmpi eq, %49, %50 : vector<32x32xi32>
    %52 = arith.extui %51 : vector<32x32xi1> to vector<32x32xi32>
    %53 = arith.sitofp %52 : vector<32x32xi32> to vector<32x32xf32>
    %54 = tpu.concatenate %1, %1, %1, %1, %1, %1, %1, %1, %1, %1, %1, %1, %1, %1, %1, %1 in 1 : vector<32x32xf32>, vector<32x32xf32>, vector<32x32xf32>, vector<32x32xf32>, vector<32x32xf32>, vector<32x32xf32>, vector<32x32xf32>, vector<32x32xf32>, vector<32x32xf32>, vector<32x32xf32>, vector<32x32xf32>, vector<32x32xf32>, vector<32x32xf32>, vector<32x32xf32>, vector<32x32xf32>, vector<32x32xf32> -> vector<32x512xf32>
    %55 = tpu.concatenate %53, %53, %53, %53, %53, %53, %53, %53, %53, %53, %53, %53, %53, %53, %53, %53 in 1 : vector<32x32xf32>, vector<32x32xf32>, vector<32x32xf32>, vector<32x32xf32>, vector<32x32xf32>, vector<32x32xf32>, vector<32x32xf32>, vector<32x32xf32>, vector<32x32xf32>, vector<32x32xf32>, vector<32x32xf32>, vector<32x32xf32>, vector<32x32xf32>, vector<32x32xf32>, vector<32x32xf32>, vector<32x32xf32> -> vector<32x512xf32>
    %56 = arith.mulf %46, %54 : vector<32x512xf32>
    %57 = math.exp %56 : vector<32x512xf32>
    %58 = arith.subf %57, %55 : vector<32x512xf32>
    %59 = arith.mulf %58, %47 : vector<32x512xf32>
    %cst_27 = arith.constant dense<0.000000e+00> : vector<32x512xf32>
    %60 = tpu.matmul %2, %59, %cst_27 {dimension_numbers = #tpu.dot_dimension_numbers<[1], [0], [0], [1], [0, 0, 1, 1], [], []>} : vector<32x32xf32>, vector<32x512xf32>, vector<32x512xf32> -> vector<32x512xf32>
    %61 = arith.mulf %60, %48 : vector<32x512xf32>
    %cst_28 = arith.constant 0.000000e+00 : f32
    %62 = vector.broadcast %cst_28 : f32 to vector<32x32xf32>
    %63 = vector.extract_strided_slice %57 {offsets = [0, 0], sizes = [32, 32], strides = [1, 1]} : vector<32x512xf32> to vector<32x32xf32>
    %64 = vector.extract_strided_slice %61 {offsets = [0, 0], sizes = [32, 32], strides = [1, 1]} : vector<32x512xf32> to vector<32x32xf32>
    %65 = vector.extract_strided_slice %10 {offsets = [0, 0], sizes = [1, 32], strides = [1, 1]} : vector<16x32xf32> to vector<1x32xf32>
    %66 = vector.broadcast %65 : vector<1x32xf32> to vector<32x32xf32>
    %67 = arith.mulf %64, %66 : vector<32x32xf32>
    %68 = arith.mulf %63, %62 : vector<32x32xf32>
    %69 = arith.addf %68, %67 : vector<32x32xf32>
    %70 = vector.extract_strided_slice %14 {offsets = [0, 0], sizes = [1, 32], strides = [1, 1]} : vector<16x32xf32> to vector<1x32xf32>
    %71 = vector.broadcast %70 : vector<1x32xf32> to vector<32x32xf32>
    %72 = arith.mulf %69, %71 : vector<32x32xf32>
    %cst_29 = arith.constant dense<0.000000e+00> : vector<32xf32>
    %73 = vector.multi_reduction <add>, %72, %cst_29 [1] : vector<32x32xf32> to vector<32xf32>
    %74 = vector.shape_cast %73 : vector<32xf32> to vector<32x1xf32>
    %c0_30 = arith.constant 0 : index
    %c0_31 = arith.constant 0 : index
    %75 = vector.load %arg9[%c0_30, %c0_31] : memref<32x16xf32, #tpu.memory_space<vmem>>, vector<32x1xf32>
    tpu.vector_store %arg9[%c0_30, %c0_31], %74 {strides = array<i32>} : memref<32x16xf32, #tpu.memory_space<vmem>>, vector<32x1xf32>,
    %76 = vector.extract_strided_slice %57 {offsets = [0, 32], sizes = [32, 32], strides = [1, 1]} : vector<32x512xf32> to vector<32x32xf32>
    %77 = vector.extract_strided_slice %61 {offsets = [0, 32], sizes = [32, 32], strides = [1, 1]} : vector<32x512xf32> to vector<32x32xf32>
    %78 = vector.extract_strided_slice %10 {offsets = [1, 0], sizes = [1, 32], strides = [1, 1]} : vector<16x32xf32> to vector<1x32xf32>
    %79 = vector.broadcast %78 : vector<1x32xf32> to vector<32x32xf32>
    %80 = arith.mulf %77, %79 : vector<32x32xf32>
    %81 = arith.mulf %76, %69 : vector<32x32xf32>
    %82 = arith.addf %81, %80 : vector<32x32xf32>
    %83 = vector.extract_strided_slice %14 {offsets = [1, 0], sizes = [1, 32], strides = [1, 1]} : vector<16x32xf32> to vector<1x32xf32>
    %84 = vector.broadcast %83 : vector<1x32xf32> to vector<32x32xf32>
    %85 = arith.mulf %82, %84 : vector<32x32xf32>
    %cst_32 = arith.constant dense<0.000000e+00> : vector<32xf32>
    %86 = vector.multi_reduction <add>, %85, %cst_32 [1] : vector<32x32xf32> to vector<32xf32>
    %87 = vector.shape_cast %86 : vector<32xf32> to vector<32x1xf32>
    %c0_33 = arith.constant 0 : index
    %c1_34 = arith.constant 1 : index
    %88 = vector.load %arg9[%c0_33, %c1_34] : memref<32x16xf32, #tpu.memory_space<vmem>>, vector<32x1xf32>
    tpu.vector_store %arg9[%c0_33, %c1_34], %87 {strides = array<i32>} : memref<32x16xf32, #tpu.memory_space<vmem>>, vector<32x1xf32>,
    %89 = vector.extract_strided_slice %57 {offsets = [0, 64], sizes = [32, 32], strides = [1, 1]} : vector<32x512xf32> to vector<32x32xf32>
    %90 = vector.extract_strided_slice %61 {offsets = [0, 64], sizes = [32, 32], strides = [1, 1]} : vector<32x512xf32> to vector<32x32xf32>
    %91 = vector.extract_strided_slice %10 {offsets = [2, 0], sizes = [1, 32], strides = [1, 1]} : vector<16x32xf32> to vector<1x32xf32>
    %92 = vector.broadcast %91 : vector<1x32xf32> to vector<32x32xf32>
    %93 = arith.mulf %90, %92 : vector<32x32xf32>
    %94 = arith.mulf %89, %82 : vector<32x32xf32>
    %95 = arith.addf %94, %93 : vector<32x32xf32>
    %96 = vector.extract_strided_slice %14 {offsets = [2, 0], sizes = [1, 32], strides = [1, 1]} : vector<16x32xf32> to vector<1x32xf32>
    %97 = vector.broadcast %96 : vector<1x32xf32> to vector<32x32xf32>
    %98 = arith.mulf %95, %97 : vector<32x32xf32>
    %cst_35 = arith.constant dense<0.000000e+00> : vector<32xf32>
    %99 = vector.multi_reduction <add>, %98, %cst_35 [1] : vector<32x32xf32> to vector<32xf32>
    %100 = vector.shape_cast %99 : vector<32xf32> to vector<32x1xf32>
    %c0_36 = arith.constant 0 : index
    %c2_37 = arith.constant 2 : index
    %101 = vector.load %arg9[%c0_36, %c2_37] : memref<32x16xf32, #tpu.memory_space<vmem>>, vector<32x1xf32>
    tpu.vector_store %arg9[%c0_36, %c2_37], %100 {strides = array<i32>} : memref<32x16xf32, #tpu.memory_space<vmem>>, vector<32x1xf32>,
    %102 = vector.extract_strided_slice %57 {offsets = [0, 96], sizes = [32, 32], strides = [1, 1]} : vector<32x512xf32> to vector<32x32xf32>
    %103 = vector.extract_strided_slice %61 {offsets = [0, 96], sizes = [32, 32], strides = [1, 1]} : vector<32x512xf32> to vector<32x32xf32>
    %104 = vector.extract_strided_slice %10 {offsets = [3, 0], sizes = [1, 32], strides = [1, 1]} : vector<16x32xf32> to vector<1x32xf32>
    %105 = vector.broadcast %104 : vector<1x32xf32> to vector<32x32xf32>
    %106 = arith.mulf %103, %105 : vector<32x32xf32>
    %107 = arith.mulf %102, %95 : vector<32x32xf32>
    %108 = arith.addf %107, %106 : vector<32x32xf32>
    %109 = vector.extract_strided_slice %14 {offsets = [3, 0], sizes = [1, 32], strides = [1, 1]} : vector<16x32xf32> to vector<1x32xf32>
    %110 = vector.broadcast %109 : vector<1x32xf32> to vector<32x32xf32>
    %111 = arith.mulf %108, %110 : vector<32x32xf32>
    %cst_38 = arith.constant dense<0.000000e+00> : vector<32xf32>
    %112 = vector.multi_reduction <add>, %111, %cst_38 [1] : vector<32x32xf32> to vector<32xf32>
    %113 = vector.shape_cast %112 : vector<32xf32> to vector<32x1xf32>
    %c0_39 = arith.constant 0 : index
    %c3_40 = arith.constant 3 : index
    %114 = vector.load %arg9[%c0_39, %c3_40] : memref<32x16xf32, #tpu.memory_space<vmem>>, vector<32x1xf32>
    tpu.vector_store %arg9[%c0_39, %c3_40], %113 {strides = array<i32>} : memref<32x16xf32, #tpu.memory_space<vmem>>, vector<32x1xf32>,
    %115 = vector.extract_strided_slice %57 {offsets = [0, 128], sizes = [32, 32], strides = [1, 1]} : vector<32x512xf32> to vector<32x32xf32>
    %116 = vector.extract_strided_slice %61 {offsets = [0, 128], sizes = [32, 32], strides = [1, 1]} : vector<32x512xf32> to vector<32x32xf32>
    %117 = vector.extract_strided_slice %10 {offsets = [4, 0], sizes = [1, 32], strides = [1, 1]} : vector<16x32xf32> to vector<1x32xf32>
    %118 = vector.broadcast %117 : vector<1x32xf32> to vector<32x32xf32>
    %119 = arith.mulf %116, %118 : vector<32x32xf32>
    %120 = arith.mulf %115, %108 : vector<32x32xf32>
    %121 = arith.addf %120, %119 : vector<32x32xf32>
    %122 = vector.extract_strided_slice %14 {offsets = [4, 0], sizes = [1, 32], strides = [1, 1]} : vector<16x32xf32> to vector<1x32xf32>
    %123 = vector.broadcast %122 : vector<1x32xf32> to vector<32x32xf32>
    %124 = arith.mulf %121, %123 : vector<32x32xf32>
    %cst_41 = arith.constant dense<0.000000e+00> : vector<32xf32>
    %125 = vector.multi_reduction <add>, %124, %cst_41 [1] : vector<32x32xf32> to vector<32xf32>
    %126 = vector.shape_cast %125 : vector<32xf32> to vector<32x1xf32>
    %c0_42 = arith.constant 0 : index
    %c4 = arith.constant 4 : index
    %127 = vector.load %arg9[%c0_42, %c4] : memref<32x16xf32, #tpu.memory_space<vmem>>, vector<32x1xf32>
    tpu.vector_store %arg9[%c0_42, %c4], %126 {strides = array<i32>} : memref<32x16xf32, #tpu.memory_space<vmem>>, vector<32x1xf32>,
    %128 = vector.extract_strided_slice %57 {offsets = [0, 160], sizes = [32, 32], strides = [1, 1]} : vector<32x512xf32> to vector<32x32xf32>
    %129 = vector.extract_strided_slice %61 {offsets = [0, 160], sizes = [32, 32], strides = [1, 1]} : vector<32x512xf32> to vector<32x32xf32>
    %130 = vector.extract_strided_slice %10 {offsets = [5, 0], sizes = [1, 32], strides = [1, 1]} : vector<16x32xf32> to vector<1x32xf32>
    %131 = vector.broadcast %130 : vector<1x32xf32> to vector<32x32xf32>
    %132 = arith.mulf %129, %131 : vector<32x32xf32>
    %133 = arith.mulf %128, %121 : vector<32x32xf32>
    %134 = arith.addf %133, %132 : vector<32x32xf32>
    %135 = vector.extract_strided_slice %14 {offsets = [5, 0], sizes = [1, 32], strides = [1, 1]} : vector<16x32xf32> to vector<1x32xf32>
    %136 = vector.broadcast %135 : vector<1x32xf32> to vector<32x32xf32>
    %137 = arith.mulf %134, %136 : vector<32x32xf32>
    %cst_43 = arith.constant dense<0.000000e+00> : vector<32xf32>
    %138 = vector.multi_reduction <add>, %137, %cst_43 [1] : vector<32x32xf32> to vector<32xf32>
    %139 = vector.shape_cast %138 : vector<32xf32> to vector<32x1xf32>
    %c0_44 = arith.constant 0 : index
    %c5 = arith.constant 5 : index
    %140 = vector.load %arg9[%c0_44, %c5] : memref<32x16xf32, #tpu.memory_space<vmem>>, vector<32x1xf32>
    tpu.vector_store %arg9[%c0_44, %c5], %139 {strides = array<i32>} : memref<32x16xf32, #tpu.memory_space<vmem>>, vector<32x1xf32>,
    %141 = vector.extract_strided_slice %57 {offsets = [0, 192], sizes = [32, 32], strides = [1, 1]} : vector<32x512xf32> to vector<32x32xf32>
    %142 = vector.extract_strided_slice %61 {offsets = [0, 192], sizes = [32, 32], strides = [1, 1]} : vector<32x512xf32> to vector<32x32xf32>
    %143 = vector.extract_strided_slice %10 {offsets = [6, 0], sizes = [1, 32], strides = [1, 1]} : vector<16x32xf32> to vector<1x32xf32>
    %144 = vector.broadcast %143 : vector<1x32xf32> to vector<32x32xf32>
    %145 = arith.mulf %142, %144 : vector<32x32xf32>
    %146 = arith.mulf %141, %134 : vector<32x32xf32>
    %147 = arith.addf %146, %145 : vector<32x32xf32>
    %148 = vector.extract_strided_slice %14 {offsets = [6, 0], sizes = [1, 32], strides = [1, 1]} : vector<16x32xf32> to vector<1x32xf32>
    %149 = vector.broadcast %148 : vector<1x32xf32> to vector<32x32xf32>
    %150 = arith.mulf %147, %149 : vector<32x32xf32>
    %cst_45 = arith.constant dense<0.000000e+00> : vector<32xf32>
    %151 = vector.multi_reduction <add>, %150, %cst_45 [1] : vector<32x32xf32> to vector<32xf32>
    %152 = vector.shape_cast %151 : vector<32xf32> to vector<32x1xf32>
    %c0_46 = arith.constant 0 : index
    %c6 = arith.constant 6 : index
    %153 = vector.load %arg9[%c0_46, %c6] : memref<32x16xf32, #tpu.memory_space<vmem>>, vector<32x1xf32>
    tpu.vector_store %arg9[%c0_46, %c6], %152 {strides = array<i32>} : memref<32x16xf32, #tpu.memory_space<vmem>>, vector<32x1xf32>,
    %154 = vector.extract_strided_slice %57 {offsets = [0, 224], sizes = [32, 32], strides = [1, 1]} : vector<32x512xf32> to vector<32x32xf32>
    %155 = vector.extract_strided_slice %61 {offsets = [0, 224], sizes = [32, 32], strides = [1, 1]} : vector<32x512xf32> to vector<32x32xf32>
    %156 = vector.extract_strided_slice %10 {offsets = [7, 0], sizes = [1, 32], strides = [1, 1]} : vector<16x32xf32> to vector<1x32xf32>
    %157 = vector.broadcast %156 : vector<1x32xf32> to vector<32x32xf32>
    %158 = arith.mulf %155, %157 : vector<32x32xf32>
    %159 = arith.mulf %154, %147 : vector<32x32xf32>
    %160 = arith.addf %159, %158 : vector<32x32xf32>
    %161 = vector.extract_strided_slice %14 {offsets = [7, 0], sizes = [1, 32], strides = [1, 1]} : vector<16x32xf32> to vector<1x32xf32>
    %162 = vector.broadcast %161 : vector<1x32xf32> to vector<32x32xf32>
    %163 = arith.mulf %160, %162 : vector<32x32xf32>
    %cst_47 = arith.constant dense<0.000000e+00> : vector<32xf32>
    %164 = vector.multi_reduction <add>, %163, %cst_47 [1] : vector<32x32xf32> to vector<32xf32>
    %165 = vector.shape_cast %164 : vector<32xf32> to vector<32x1xf32>
    %c0_48 = arith.constant 0 : index
    %c7 = arith.constant 7 : index
    %166 = vector.load %arg9[%c0_48, %c7] : memref<32x16xf32, #tpu.memory_space<vmem>>, vector<32x1xf32>
    tpu.vector_store %arg9[%c0_48, %c7], %165 {strides = array<i32>} : memref<32x16xf32, #tpu.memory_space<vmem>>, vector<32x1xf32>,
    %cst_49 = arith.constant 0.000000e+00 : f32
    %167 = vector.broadcast %cst_49 : f32 to vector<32x32xf32>
    %168 = vector.extract_strided_slice %57 {offsets = [0, 256], sizes = [32, 32], strides = [1, 1]} : vector<32x512xf32> to vector<32x32xf32>
    %169 = vector.extract_strided_slice %61 {offsets = [0, 256], sizes = [32, 32], strides = [1, 1]} : vector<32x512xf32> to vector<32x32xf32>
    %170 = vector.extract_strided_slice %10 {offsets = [8, 0], sizes = [1, 32], strides = [1, 1]} : vector<16x32xf32> to vector<1x32xf32>
    %171 = vector.broadcast %170 : vector<1x32xf32> to vector<32x32xf32>
    %172 = arith.mulf %169, %171 : vector<32x32xf32>
    %173 = arith.mulf %168, %167 : vector<32x32xf32>
    %174 = arith.addf %173, %172 : vector<32x32xf32>
    %175 = vector.extract_strided_slice %14 {offsets = [8, 0], sizes = [1, 32], strides = [1, 1]} : vector<16x32xf32> to vector<1x32xf32>
    %176 = vector.broadcast %175 : vector<1x32xf32> to vector<32x32xf32>
    %177 = arith.mulf %174, %176 : vector<32x32xf32>
    %cst_50 = arith.constant dense<0.000000e+00> : vector<32xf32>
    %178 = vector.multi_reduction <add>, %177, %cst_50 [1] : vector<32x32xf32> to vector<32xf32>
    %179 = vector.shape_cast %178 : vector<32xf32> to vector<32x1xf32>
    %c0_51 = arith.constant 0 : index
    %c8 = arith.constant 8 : index
    %180 = vector.load %arg9[%c0_51, %c8] : memref<32x16xf32, #tpu.memory_space<vmem>>, vector<32x1xf32>
    tpu.vector_store %arg9[%c0_51, %c8], %179 {strides = array<i32>} : memref<32x16xf32, #tpu.memory_space<vmem>>, vector<32x1xf32>,
    %181 = vector.extract_strided_slice %57 {offsets = [0, 288], sizes = [32, 32], strides = [1, 1]} : vector<32x512xf32> to vector<32x32xf32>
    %182 = vector.extract_strided_slice %61 {offsets = [0, 288], sizes = [32, 32], strides = [1, 1]} : vector<32x512xf32> to vector<32x32xf32>
    %183 = vector.extract_strided_slice %10 {offsets = [9, 0], sizes = [1, 32], strides = [1, 1]} : vector<16x32xf32> to vector<1x32xf32>
    %184 = vector.broadcast %183 : vector<1x32xf32> to vector<32x32xf32>
    %185 = arith.mulf %182, %184 : vector<32x32xf32>
    %186 = arith.mulf %181, %174 : vector<32x32xf32>
    %187 = arith.addf %186, %185 : vector<32x32xf32>
    %188 = vector.extract_strided_slice %14 {offsets = [9, 0], sizes = [1, 32], strides = [1, 1]} : vector<16x32xf32> to vector<1x32xf32>
    %189 = vector.broadcast %188 : vector<1x32xf32> to vector<32x32xf32>
    %190 = arith.mulf %187, %189 : vector<32x32xf32>
    %cst_52 = arith.constant dense<0.000000e+00> : vector<32xf32>
    %191 = vector.multi_reduction <add>, %190, %cst_52 [1] : vector<32x32xf32> to vector<32xf32>
    %192 = vector.shape_cast %191 : vector<32xf32> to vector<32x1xf32>
    %c0_53 = arith.constant 0 : index
    %c9 = arith.constant 9 : index
    %193 = vector.load %arg9[%c0_53, %c9] : memref<32x16xf32, #tpu.memory_space<vmem>>, vector<32x1xf32>
    tpu.vector_store %arg9[%c0_53, %c9], %192 {strides = array<i32>} : memref<32x16xf32, #tpu.memory_space<vmem>>, vector<32x1xf32>,
    %194 = vector.extract_strided_slice %57 {offsets = [0, 320], sizes = [32, 32], strides = [1, 1]} : vector<32x512xf32> to vector<32x32xf32>
    %195 = vector.extract_strided_slice %61 {offsets = [0, 320], sizes = [32, 32], strides = [1, 1]} : vector<32x512xf32> to vector<32x32xf32>
    %196 = vector.extract_strided_slice %10 {offsets = [10, 0], sizes = [1, 32], strides = [1, 1]} : vector<16x32xf32> to vector<1x32xf32>
    %197 = vector.broadcast %196 : vector<1x32xf32> to vector<32x32xf32>
    %198 = arith.mulf %195, %197 : vector<32x32xf32>
    %199 = arith.mulf %194, %187 : vector<32x32xf32>
    %200 = arith.addf %199, %198 : vector<32x32xf32>
    %201 = vector.extract_strided_slice %14 {offsets = [10, 0], sizes = [1, 32], strides = [1, 1]} : vector<16x32xf32> to vector<1x32xf32>
    %202 = vector.broadcast %201 : vector<1x32xf32> to vector<32x32xf32>
    %203 = arith.mulf %200, %202 : vector<32x32xf32>
    %cst_54 = arith.constant dense<0.000000e+00> : vector<32xf32>
    %204 = vector.multi_reduction <add>, %203, %cst_54 [1] : vector<32x32xf32> to vector<32xf32>
    %205 = vector.shape_cast %204 : vector<32xf32> to vector<32x1xf32>
    %c0_55 = arith.constant 0 : index
    %c10 = arith.constant 10 : index
    %206 = vector.load %arg9[%c0_55, %c10] : memref<32x16xf32, #tpu.memory_space<vmem>>, vector<32x1xf32>
    tpu.vector_store %arg9[%c0_55, %c10], %205 {strides = array<i32>} : memref<32x16xf32, #tpu.memory_space<vmem>>, vector<32x1xf32>,
    %207 = vector.extract_strided_slice %57 {offsets = [0, 352], sizes = [32, 32], strides = [1, 1]} : vector<32x512xf32> to vector<32x32xf32>
    %208 = vector.extract_strided_slice %61 {offsets = [0, 352], sizes = [32, 32], strides = [1, 1]} : vector<32x512xf32> to vector<32x32xf32>
    %209 = vector.extract_strided_slice %10 {offsets = [11, 0], sizes = [1, 32], strides = [1, 1]} : vector<16x32xf32> to vector<1x32xf32>
    %210 = vector.broadcast %209 : vector<1x32xf32> to vector<32x32xf32>
    %211 = arith.mulf %208, %210 : vector<32x32xf32>
    %212 = arith.mulf %207, %200 : vector<32x32xf32>
    %213 = arith.addf %212, %211 : vector<32x32xf32>
    %214 = vector.extract_strided_slice %14 {offsets = [11, 0], sizes = [1, 32], strides = [1, 1]} : vector<16x32xf32> to vector<1x32xf32>
    %215 = vector.broadcast %214 : vector<1x32xf32> to vector<32x32xf32>
    %216 = arith.mulf %213, %215 : vector<32x32xf32>
    %cst_56 = arith.constant dense<0.000000e+00> : vector<32xf32>
    %217 = vector.multi_reduction <add>, %216, %cst_56 [1] : vector<32x32xf32> to vector<32xf32>
    %218 = vector.shape_cast %217 : vector<32xf32> to vector<32x1xf32>
    %c0_57 = arith.constant 0 : index
    %c11 = arith.constant 11 : index
    %219 = vector.load %arg9[%c0_57, %c11] : memref<32x16xf32, #tpu.memory_space<vmem>>, vector<32x1xf32>
    tpu.vector_store %arg9[%c0_57, %c11], %218 {strides = array<i32>} : memref<32x16xf32, #tpu.memory_space<vmem>>, vector<32x1xf32>,
    %220 = vector.extract_strided_slice %57 {offsets = [0, 384], sizes = [32, 32], strides = [1, 1]} : vector<32x512xf32> to vector<32x32xf32>
    %221 = vector.extract_strided_slice %61 {offsets = [0, 384], sizes = [32, 32], strides = [1, 1]} : vector<32x512xf32> to vector<32x32xf32>
    %222 = vector.extract_strided_slice %10 {offsets = [12, 0], sizes = [1, 32], strides = [1, 1]} : vector<16x32xf32> to vector<1x32xf32>
    %223 = vector.broadcast %222 : vector<1x32xf32> to vector<32x32xf32>
    %224 = arith.mulf %221, %223 : vector<32x32xf32>
    %225 = arith.mulf %220, %213 : vector<32x32xf32>
    %226 = arith.addf %225, %224 : vector<32x32xf32>
    %227 = vector.extract_strided_slice %14 {offsets = [12, 0], sizes = [1, 32], strides = [1, 1]} : vector<16x32xf32> to vector<1x32xf32>
    %228 = vector.broadcast %227 : vector<1x32xf32> to vector<32x32xf32>
    %229 = arith.mulf %226, %228 : vector<32x32xf32>
    %cst_58 = arith.constant dense<0.000000e+00> : vector<32xf32>
    %230 = vector.multi_reduction <add>, %229, %cst_58 [1] : vector<32x32xf32> to vector<32xf32>
    %231 = vector.shape_cast %230 : vector<32xf32> to vector<32x1xf32>
    %c0_59 = arith.constant 0 : index
    %c12 = arith.constant 12 : index
    %232 = vector.load %arg9[%c0_59, %c12] : memref<32x16xf32, #tpu.memory_space<vmem>>, vector<32x1xf32>
    tpu.vector_store %arg9[%c0_59, %c12], %231 {strides = array<i32>} : memref<32x16xf32, #tpu.memory_space<vmem>>, vector<32x1xf32>,
    %233 = vector.extract_strided_slice %57 {offsets = [0, 416], sizes = [32, 32], strides = [1, 1]} : vector<32x512xf32> to vector<32x32xf32>
    %234 = vector.extract_strided_slice %61 {offsets = [0, 416], sizes = [32, 32], strides = [1, 1]} : vector<32x512xf32> to vector<32x32xf32>
    %235 = vector.extract_strided_slice %10 {offsets = [13, 0], sizes = [1, 32], strides = [1, 1]} : vector<16x32xf32> to vector<1x32xf32>
    %236 = vector.broadcast %235 : vector<1x32xf32> to vector<32x32xf32>
    %237 = arith.mulf %234, %236 : vector<32x32xf32>
    %238 = arith.mulf %233, %226 : vector<32x32xf32>
    %239 = arith.addf %238, %237 : vector<32x32xf32>
    %240 = vector.extract_strided_slice %14 {offsets = [13, 0], sizes = [1, 32], strides = [1, 1]} : vector<16x32xf32> to vector<1x32xf32>
    %241 = vector.broadcast %240 : vector<1x32xf32> to vector<32x32xf32>
    %242 = arith.mulf %239, %241 : vector<32x32xf32>
    %cst_60 = arith.constant dense<0.000000e+00> : vector<32xf32>
    %243 = vector.multi_reduction <add>, %242, %cst_60 [1] : vector<32x32xf32> to vector<32xf32>
    %244 = vector.shape_cast %243 : vector<32xf32> to vector<32x1xf32>
    %c0_61 = arith.constant 0 : index
    %c13 = arith.constant 13 : index
    %245 = vector.load %arg9[%c0_61, %c13] : memref<32x16xf32, #tpu.memory_space<vmem>>, vector<32x1xf32>
    tpu.vector_store %arg9[%c0_61, %c13], %244 {strides = array<i32>} : memref<32x16xf32, #tpu.memory_space<vmem>>, vector<32x1xf32>,
    %246 = vector.extract_strided_slice %57 {offsets = [0, 448], sizes = [32, 32], strides = [1, 1]} : vector<32x512xf32> to vector<32x32xf32>
    %247 = vector.extract_strided_slice %61 {offsets = [0, 448], sizes = [32, 32], strides = [1, 1]} : vector<32x512xf32> to vector<32x32xf32>
    %248 = vector.extract_strided_slice %10 {offsets = [14, 0], sizes = [1, 32], strides = [1, 1]} : vector<16x32xf32> to vector<1x32xf32>
    %249 = vector.broadcast %248 : vector<1x32xf32> to vector<32x32xf32>
    %250 = arith.mulf %247, %249 : vector<32x32xf32>
    %251 = arith.mulf %246, %239 : vector<32x32xf32>
    %252 = arith.addf %251, %250 : vector<32x32xf32>
    %253 = vector.extract_strided_slice %14 {offsets = [14, 0], sizes = [1, 32], strides = [1, 1]} : vector<16x32xf32> to vector<1x32xf32>
    %254 = vector.broadcast %253 : vector<1x32xf32> to vector<32x32xf32>
    %255 = arith.mulf %252, %254 : vector<32x32xf32>
    %cst_62 = arith.constant dense<0.000000e+00> : vector<32xf32>
    %256 = vector.multi_reduction <add>, %255, %cst_62 [1] : vector<32x32xf32> to vector<32xf32>
    %257 = vector.shape_cast %256 : vector<32xf32> to vector<32x1xf32>
    %c0_63 = arith.constant 0 : index
    %c14 = arith.constant 14 : index
    %258 = vector.load %arg9[%c0_63, %c14] : memref<32x16xf32, #tpu.memory_space<vmem>>, vector<32x1xf32>
    tpu.vector_store %arg9[%c0_63, %c14], %257 {strides = array<i32>} : memref<32x16xf32, #tpu.memory_space<vmem>>, vector<32x1xf32>,
    %259 = vector.extract_strided_slice %57 {offsets = [0, 480], sizes = [32, 32], strides = [1, 1]} : vector<32x512xf32> to vector<32x32xf32>
    %260 = vector.extract_strided_slice %61 {offsets = [0, 480], sizes = [32, 32], strides = [1, 1]} : vector<32x512xf32> to vector<32x32xf32>
    %261 = vector.extract_strided_slice %10 {offsets = [15, 0], sizes = [1, 32], strides = [1, 1]} : vector<16x32xf32> to vector<1x32xf32>
    %262 = vector.broadcast %261 : vector<1x32xf32> to vector<32x32xf32>
    %263 = arith.mulf %260, %262 : vector<32x32xf32>
    %264 = arith.mulf %259, %252 : vector<32x32xf32>
    %265 = arith.addf %264, %263 : vector<32x32xf32>
    %266 = vector.extract_strided_slice %14 {offsets = [15, 0], sizes = [1, 32], strides = [1, 1]} : vector<16x32xf32> to vector<1x32xf32>
    %267 = vector.broadcast %266 : vector<1x32xf32> to vector<32x32xf32>
    %268 = arith.mulf %265, %267 : vector<32x32xf32>
    %cst_64 = arith.constant dense<0.000000e+00> : vector<32xf32>
    %269 = vector.multi_reduction <add>, %268, %cst_64 [1] : vector<32x32xf32> to vector<32xf32>
    %270 = vector.shape_cast %269 : vector<32xf32> to vector<32x1xf32>
    %c0_65 = arith.constant 0 : index
    %c15 = arith.constant 15 : index
    %271 = vector.load %arg9[%c0_65, %c15] : memref<32x16xf32, #tpu.memory_space<vmem>>, vector<32x1xf32>
    tpu.vector_store %arg9[%c0_65, %c15], %270 {strides = array<i32>} : memref<32x16xf32, #tpu.memory_space<vmem>>, vector<32x1xf32>,
    %c0_66 = arith.constant 0 : index
    %c0_67 = arith.constant 0 : index
    %272 = vector.load %arg9[%c0_66, %c0_67] : memref<32x16xf32, #tpu.memory_space<vmem>>, vector<32x16xf32>
    %273 = tpu.transpose %272, [1, 0] : vector<32x16xf32> -> vector<16x32xf32>
    %274 = vector.broadcast %6 : vector<1x32xf32> to vector<16x32xf32>
    %275 = arith.mulf %0, %274 : vector<16x32xf32>
    %276 = arith.addf %273, %275 : vector<16x32xf32>
    %c0_68 = arith.constant 0 : index
    %c0_69 = arith.constant 0 : index
    %277 = vector.load %arg8[%c0_68, %c0_69] : memref<16x32xf32, #tpu.memory_space<vmem>>, vector<16x32xf32>
    tpu.vector_store %arg8[%c0_68, %c0_69], %276 {strides = array<i32>} : memref<16x32xf32, #tpu.memory_space<vmem>>, vector<16x32xf32>,
    return
  }
  func.func @transform_0(%arg0: i32) -> (i32, i32) {
    %c0_i32 = arith.constant 0 : i32
    %c0_i32_0 = arith.constant 0 : i32
    return %arg0, %c0_i32 : i32, i32
  }
  func.func @transform_1(%arg0: i32) -> (i32, i32) {
    %c0_i32 = arith.constant 0 : i32
    %c0_i32_0 = arith.constant 0 : i32
    %c0_i32_1 = arith.constant 0 : i32
    return %c0_i32, %c0_i32_0 : i32, i32
  }
  func.func @transform_2(%arg0: i32) -> (i32, i32) {
    %c0_i32 = arith.constant 0 : i32
    %c0_i32_0 = arith.constant 0 : i32
    %c0_i32_1 = arith.constant 0 : i32
    return %c0_i32, %c0_i32_0 : i32, i32
  }
  func.func @transform_3(%arg0: i32) -> (i32, i32) {
    %c0_i32 = arith.constant 0 : i32
    %c0_i32_0 = arith.constant 0 : i32
    %c0_i32_1 = arith.constant 0 : i32
    return %c0_i32, %c0_i32_0 : i32, i32
  }
  func.func @transform_4(%arg0: i32) -> (i32, i32) {
    %c0_i32 = arith.constant 0 : i32
    %c0_i32_0 = arith.constant 0 : i32
    %c0_i32_1 = arith.constant 0 : i32
    return %c0_i32, %c0_i32_0 : i32, i32
  }
  func.func @transform_5(%arg0: i32) -> (i32, i32) {
    %c0_i32 = arith.constant 0 : i32
    %c0_i32_0 = arith.constant 0 : i32
    %c0_i32_1 = arith.constant 0 : i32
    return %c0_i32, %c0_i32_0 : i32, i32
  }
  func.func @transform_6(%arg0: i32) -> (i32, i32) {
    %c0_i32 = arith.constant 0 : i32
    %c0_i32_0 = arith.constant 0 : i32
    %c0_i32_1 = arith.constant 0 : i32
    return %c0_i32, %c0_i32_0 : i32, i32
  }
  func.func @transform_7(%arg0: i32) -> (i32, i32) {
    %c0_i32 = arith.constant 0 : i32
    %c0_i32_0 = arith.constant 0 : i32
    return %arg0, %c0_i32 : i32, i32
  }
}

</mosaic_0001>

<bundles_post_ra>
// kernel: tpu_custom_call.1
= control target key start
LH: loop header
LB: loop body
LE: loop exit
PB: predicated region body
PF: predicated region fallthrough
CT: control target
= control target key end

     0   :  { %12 = vsyncpa [#allocation4], 0  ;;  %s4402_s0 = inlined_call_operand.hbm [shape: f32[16,32], index: 0, kind: input, shape index: {}]   ;;  %s4403_s1 = inlined_call_operand.hbm [shape: f32[32,32], index: 1, kind: input, shape index: {}]   ;;  %s4404_s2 = inlined_call_operand.hbm [shape: f32[32,32], index: 2, kind: input, shape index: {}]   ;;  %s4405_s3 = inlined_call_operand.hbm [shape: f32[32,32], index: 3, kind: input, shape index: {}]   ;;  %s4406_s4 = inlined_call_operand.hbm [shape: f32[32,32], index: 4, kind: input, shape index: {}]   ;;  %s4407_s5 = inlined_call_operand.hbm [shape: f32[32,32], index: 5, kind: input, shape index: {}]   ;;  %s4408_s6 = inlined_call_operand.vmem [shape: f32[4,32], index: 6, kind: input, shape index: {}]   ;;  %s4409_s7 = inlined_call_operand.hbm [shape: f32[16,32], index: 7, kind: output, shape index: {}]  }
   0x1   :  { %13 = vsyncpa [#allocation7], 0 }
   0x2   :  { %14 = vsyncpa [#allocation10], 0 }
   0x3   :  { %15 = vsyncpa [#allocation13], 0 }
   0x4   :  { %16 = vsyncpa [#allocation5], 0  ;;  %s3109_s24 = smov [#allocation6]   ;;  %s3110_s26 = smov [#allocation9]  }
   0x5   :  { %s34_s25 = sshll.u32 %s3109_s24, 4  ;;  %s58_s27 = sshll.u32 %s3110_s26, 4  ;;  %s35_s25 = int_to_ptr.vmem [resolvable:$true] %s34_s25  ;;  %s59_s27 = int_to_ptr.vmem [resolvable:$true] %s58_s27 }
   0x6   :  { %s2967_s28 = scalar_lea.vmem %s35_s25, 512  ;;  %p2972_p1 = scmp.lt.s32.totalorder %s35_s25, %s35_s25 }
   0x7   :  { %p2968_p0 = scmp.ne.s32.totalorder %s35_s25, %s2967_s28  ;;  %p2973_p2 = scmp.lt.s32.totalorder %s2967_s28, %s2967_s28 }
   0x9   :  { %p2974_p3 = por %p2973_p2, %p2972_p1 }
   0xb   :  { %p2975_p4 = pnand %p2974_p3, %p2968_p0 }
   0xd   :  { %2978 = shalt.err (!%p2975_p4)
}
   0xe   :  { %s3111_s29 = smov 128   ;;  %s3112_s30 = smov 8  }
   0xf   :  { %40 = dma.hbm_to_vmem [thread:$0]  %s4403_s1, 512, %s35_s25, [#allocation7], %s3111_s29, %s3111_s29, %s3112_s30  }
  0x10   :  { %s2987_s10 = scalar_lea.vmem %s59_s27, 512  ;;  %p2992_p6 = scmp.lt.s32.totalorder %s59_s27, %s59_s27 }
  0x11   :  { %p2988_p5 = scmp.ne.s32.totalorder %s59_s27, %s2987_s10  ;;  %p2993_p7 = scmp.lt.s32.totalorder %s2987_s10, %s2987_s10 }
  0x13   :  { %p2994_p8 = por %p2993_p7, %p2992_p6 }
  0x15   :  { %p2995_p9 = pnand %p2994_p8, %p2988_p5 }
  0x17   :  { %2998 = shalt.err (!%p2995_p9)
}
  0x18   :  { %64 = dma.hbm_to_vmem [thread:$0]  %s4405_s3, 512, %s59_s27, [#allocation10], %s3111_s29, %s3111_s29, %s3112_s30  }
  0x19   :  { %s3113_s13 = smov [#allocation3]   ;;  %s3114_s15 = smov [#allocation8]  }
  0x1a   :  { %s22_s14 = sshll.u32 %s3113_s13, 4  ;;  %s46_s16 = sshll.u32 %s3114_s15, 4  ;;  %s23_s14 = int_to_ptr.vmem [resolvable:$true] %s22_s14  ;;  %s47_s16 = int_to_ptr.vmem [resolvable:$true] %s46_s16 }
  0x1b   :  { %s3007_s1 = scalar_lea.vmem %s23_s14, 256  ;;  %p3012_p11 = scmp.lt.s32.totalorder %s23_s14, %s23_s14 }
  0x1c   :  { %p3008_p10 = scmp.ne.s32.totalorder %s23_s14, %s3007_s1  ;;  %p3013_p12 = scmp.lt.s32.totalorder %s3007_s1, %s3007_s1 }
  0x1e   :  { %p3014_p13 = por %p3013_p12, %p3012_p11 }
  0x20   :  { %p3015_p0 = pnand %p3014_p13, %p3008_p10 }
  0x22   :  { %3018 = shalt.err (!%p3015_p0)
}
  0x23   :  { %28 = dma.hbm_to_vmem [thread:$0]  %s4402_s0, 256, %s23_s14, [#allocation4], %s3111_s29, %s3111_s29, %s3112_s30  }
  0x24   :  { %s3027_s3 = scalar_lea.vmem %s47_s16, 512  ;;  %p3032_p2 = scmp.lt.s32.totalorder %s47_s16, %s47_s16 }
  0x25   :  { %p3028_p1 = scmp.ne.s32.totalorder %s47_s16, %s3027_s3  ;;  %p3033_p3 = scmp.lt.s32.totalorder %s3027_s3, %s3027_s3 }
  0x27   :  { %p3034_p4 = por %p3033_p3, %p3032_p2 }
  0x29   :  { %p3035_p5 = pnand %p3034_p4, %p3028_p1 }
  0x2b   :  { %3038 = shalt.err (!%p3035_p5)
}
  0x2c   :  { %52 = dma.hbm_to_vmem [thread:$0]  %s4404_s2, 512, %s47_s16, [#allocation7], %s3111_s29, %s3111_s29, %s3112_s30  }
  0x2d   :  { %s3115_s21 = smov [#allocation11]   ;;  %s3116_s23 = smov [#allocation12]  }
  0x2e   :  { %s70_s22 = sshll.u32 %s3115_s21, 4  ;;  %s82_s24 = sshll.u32 %s3116_s23, 4  ;;  %s71_s22 = int_to_ptr.vmem [resolvable:$true] %s70_s22  ;;  %s83_s24 = int_to_ptr.vmem [resolvable:$true] %s82_s24 }
  0x2f   :  { %s3047_s0 = scalar_lea.vmem %s71_s22, 512  ;;  %p3052_p7 = scmp.lt.s32.totalorder %s71_s22, %s71_s22 }
  0x30   :  { %p3048_p6 = scmp.ne.s32.totalorder %s71_s22, %s3047_s0  ;;  %p3053_p8 = scmp.lt.s32.totalorder %s3047_s0, %s3047_s0 }
  0x32   :  { %p3054_p9 = por %p3053_p8, %p3052_p7 }
  0x34   :  { %p3055_p10 = pnand %p3054_p9, %p3048_p6 }
  0x36   :  { %3058 = shalt.err (!%p3055_p10)
}
  0x37   :  { %76 = dma.hbm_to_vmem [thread:$0]  %s4406_s4, 512, %s71_s22, [#allocation10], %s3111_s29, %s3111_s29, %s3112_s30  }
  0x38   :  { %s3067_s2 = scalar_lea.vmem %s83_s24, 512  ;;  %p3072_p12 = scmp.lt.s32.totalorder %s83_s24, %s83_s24 }
  0x39   :  { %p3068_p11 = scmp.ne.s32.totalorder %s83_s24, %s3067_s2  ;;  %p3073_p13 = scmp.lt.s32.totalorder %s3067_s2, %s3067_s2 }
  0x3b   :  { %p3074_p0 = por %p3073_p13, %p3072_p12 }
  0x3d   :  { %p3075_p1 = pnand %p3074_p0, %p3068_p11 }
  0x3f   :  { %3078 = shalt.err (!%p3075_p1)
}
  0x40   :  { %88 = dma.hbm_to_vmem [thread:$0]  %s4407_s5, 512, %s83_s24, [#allocation13], %s3111_s29, %s3111_s29, %s3112_s30  }
  0x41   :  { %3099 = dma.done.wait [#allocation4], 256  }
  0x42   :  { %3100 = vsyncadd [#allocation4], 4294967040 }
  0x43   :  { %3101 = dma.done.wait [#allocation7], 1024  }
  0x44   :  { %3102 = vsyncadd [#allocation7], 4294966272 }
  0x45   :  { %3103 = dma.done.wait [#allocation10], 1024  }
  0x46   :  { %3104 = vsyncadd [#allocation10], 4294966272 }
  0x47   :  { %3105 = dma.done.wait [#allocation13], 512  }
  0x48   :  { %3106 = vsyncadd [#allocation13], 4294966784  ;;  %vm131_vm0 = vcmask 261120   ;;  %v126_v0 = vld [vmem:[#allocation9 + $0x18] sm:$0xff]  ;;  %v125_v1 = vld [vmem:[#allocation9 + $0x10] sm:$0xff]  ;;  %s3117_s4 = smov 32   ;;  %v469_v18 = vlaneseq }
  0x49   :  { %2828 = vmatprep.subr.mxu0 %v126_v0  ;;  %v3199_v2 = vld [vmem:[#allocation3] sm:$0xff]  ;;  %v124_v3 = vld [vmem:[#allocation9 + $0x8] sm:$0xff]  ;;  %v216_v4 = vld [vmem:[#allocation11 + $0x18] sm:$0xff]  ;;  %v4410_v16 = vmov 0.0   ;;  %s3119_s5 = smov 64   ;;  %s3120_s8 = smov 96  }
  0x4a   :  { %2829 = vmatpush3.msra.mxu0 %v126_v0  ;;  %2836 = vmatprep.mubr.msk.f32.mxu0 %vm131_vm0, %v3199_v2  ;;  %v215_v5 = vld [vmem:[#allocation11 + $0x10] sm:$0xff]  ;;  %v123_v6 = vld [vmem:[#allocation9] sm:$0xff]  ;;  %v214_v7 = vld [vmem:[#allocation11 + $0x8] sm:$0xff]  ;;  %v3241_v20 = vshrl.u32 %v469_v18, 7  ;;  %v3245_v21 = vand.u32 127, %v469_v18  ;;  %s3122_s1 = smov [#allocation14]  }
  0x4b   :  { %2830 = vmatprep.subr.mxu0 %v125_v1  ;;  %2839 = vmatprep.subr.mxu1 %v216_v4  ;;  %v3203_v8 = vld [vmem:[#allocation3 + $0x8] sm:$0xff]  ;;  %v213_v10 = vld [vmem:[#allocation11] sm:$0xff]  ;;  %v298_v11 = vld [vmem:[#allocation12 + $0x10] sm:$0xff]  ;;  %s2717_s17 = sshll.u32 %s3122_s1, 4  ;;  %s2718_s17 = int_to_ptr.vmem [resolvable:$true] %s2717_s17 }
  0x4c   :  { %2831 = vmatpush3.msra.mxu0 %v125_v1  ;;  %2840 = vmatpush3.msra.mxu1 %v216_v4  ;;  %v299_v9 = vld [vmem:[#allocation12 + $0x18] sm:$0xff]  ;;  %v297_v12 = vld [vmem:[#allocation12 + $0x8] sm:$0xff]  ;;  %v296_v13 = vld [vmem:[#allocation12] sm:$0xff]  ;;  %v1092_v22 = vadd.s32 16, %v3241_v20  ;;  %v1093_v23 = vadd.s32 24, %v3241_v20  ;;  %v3266_v27 = vadd.s32 8, %v3241_v20  ;;  %vm1094_vm3 = vcmp.eq.s32.totalorder %v3241_v20, %v3245_v21  ;;  %p3084_p3 = scmp.lt.s32.totalorder %s2718_s17, %s2718_s17 }
  0x4d   :  { %2832 = vmatprep.subr.mxu0 %v124_v3  ;;  %2841 = vmatprep.subr.mxu1 %v215_v5  ;;  %v3209_v14 = vld [vmem:[#allocation6 + $0x18] sm:$0xff]  ;;  %v3217_v15 = vld [vmem:[#allocation6 + $0x10] sm:$0xff]  ;;  %v3231_v17 = vld [vmem:[#allocation6 + $0x8] sm:$0xff]  ;;  %v3275_v28 = vsel %vm1094_vm3, 1.0, %v4410_v16  ;;  %v1622_v32 = vsub.s32 2, %v3241_v20  ;;  %v1541_v33 = vsub.s32 1, %v3241_v20 }
  0x4e   :  { %2833 = vmatpush3.msra.mxu0 %v124_v3  ;;  %2842 = vmatpush3.msra.mxu1 %v215_v5  ;;  %v3239_v19 = vld [vmem:[#allocation6] sm:$0xff]  ;;  %vm1096_vm1 = vcmp.eq.s32.totalorder %v1092_v22, %v3245_v21  ;;  %vm1097_vm2 = vcmp.eq.s32.totalorder %v1093_v23, %v3245_v21  ;;  %vm1095_vm4 = vcmp.eq.s32.totalorder %v3266_v27, %v3245_v21  ;;  %v2732_v31 = vld [vmem:[%s4408_s6] ss:$0 sm:$0xff]  ;;  %v2735_v38 = vld [vmem:[%s4408_s6 + $0x1] ss:$0 sm:$0xff]  ;;  %v1703_v39 = vsub.s32 3, %v3241_v20 }
  0x4f   :  { %2834 = vmatprep.subr.mxu0 %v123_v6  ;;  %2843 = vmatprep.subr.mxu1 %v214_v7  ;;  %v3256_v24 = vsel %vm1096_vm1, 1.0, %v4410_v16  ;;  %v3259_v25 = vsel %vm1097_vm2, 1.0, %v4410_v16  ;;  %v3278_v29 = vsel %vm1095_vm4, 1.0, %v4410_v16  ;;  %v3300_v40 = vsub.s32 6, %v3241_v20  ;;  %v2738_v63 = vld [vmem:[%s4408_s6 + $0x2] ss:$0 sm:$0xff] }
  0x50   :  { %2835 = vmatpush3.msra.mxu0 %v123_v6  ;;  %2844 = vmatpush3.msra.mxu1 %v214_v7  ;;  %v2879_v26 = vpack.i.bf16 %v3256_v24, %v3259_v25  ;;  %v2894_v30 = vpack.i.bf16 %v3275_v28, %v3278_v29  ;;  %v3310_v45 = vsub.s32 5, %v3241_v20  ;;  %v3318_v48 = vsub.s32 4, %v3241_v20  ;;  %s3079_s18 = scalar_lea.vmem %s2718_s17, 256 }
  0x51   :  { %2837 = vmatmul.mubr.msk.f32.vlgmr.msra.gmra.mxu0 %vm131_vm0, %v3203_v8  ;;  %2850 = vmatprep.subr.mxu0 %v299_v9  ;;  %v3329_v52 = vsub.s32 7, %v3241_v20  ;;  %v478_v6 = vmul.u32 32, %v3266_v27  ;;  %v474_v22 = vadd.s32 128, %v3245_v21  ;;  %v475_v27 = vadd.s32 256, %v3245_v21  ;;  %p3080_p2 = scmp.ne.s32.totalorder %s2718_s17, %s3079_s18  ;;  %p3085_p4 = scmp.lt.s32.totalorder %s3079_s18, %s3079_s18 }
  0x52   :  { %2851 = vmatpush3.msra.mxu0 %v299_v9  ;;  %2845 = vmatprep.subr.mxu1 %v213_v10 }
  0x53   :  { %2852 = vmatprep.subr.mxu0 %v298_v11  ;;  %2846 = vmatpush3.msra.mxu1 %v213_v10  ;;  %v488_v23 = vadd.s32 32, %v478_v6  ;;  %vm483_vm5 = vcmp.ge.s32.totalorder %v3245_v21, %v478_v6  ;;  %vm484_vm6 = vcmp.ge.s32.totalorder %v474_v22, %v478_v6  ;;  %vm485_vm12 = vcmp.ge.s32.totalorder %v475_v27, %v478_v6  ;;  %p3086_p5 = por %p3085_p4, %p3084_p3 }
  0x54   :  { %2853 = vmatpush3.msra.mxu0 %v298_v11  ;;  %2847 = vmatprep.mubr.msk.f32.mxu1 %vm131_vm0, %v3199_v2 }
  0x55   :  { %2854 = vmatprep.subr.mxu0 %v297_v12  ;;  %2858 = vmatprep.mubr.msk.f32.mxu0 %vm131_vm0, %v3199_v2  ;;  %vm494_vm7 = vcmp.lt.s32.totalorder %v474_v22, %v488_v23  ;;  %vm493_vm11 = vcmp.lt.s32.totalorder %v3245_v21, %v488_v23  ;;  %vm495_vm13 = vcmp.lt.s32.totalorder %v475_v27, %v488_v23  ;;  %p3087_p6 = pnand %p3086_p5, %p3080_p2 }
  0x56   :  { %2855 = vmatpush3.msra.mxu0 %v297_v12  ;;  %2848 = vmatmul.mubr.msk.f32.vlgmr.msra.gmra.mxu1 %vm131_vm0, %v3203_v8  ;;  %vm3376_vm9 = vmand %vm484_vm6, %vm494_vm7 }
  0x57   :  { %2856 = vmatprep.subr.mxu0 %v296_v13  ;;  %1116 = vrot.lane.b32.xlu1 %v3209_v14, %s3117_s4  ;;  %vm3397_vm1 = vmand %vm483_vm5, %vm493_vm11 }
  0x58   :  { %2857 = vmatpush3.msra.mxu0 %v296_v13  ;;  %1114 = vrot.lane.b32.xlu0 %v3217_v15, %s3117_s4  ;;  %vm3405_vm4 = vmand %vm485_vm12, %vm495_vm13 }
  0x59   :  { %2859 = vmatmul.mubr.msk.f32.vlgmr.msra.gmra.mxu0 %vm131_vm0, %v3203_v8  ;;  %598 = vmatprep.mubr.f32.mxu1 %v4410_v16 }
  0x5a   :  { %687 = vmatprep.mubr.f32.mxu0 %v4410_v16 }
  0x5b   :  { %1128 = vrot.lane.b32.xlu1 %v3209_v14, %s3119_s5 }
  0x5c   :  { %2900 = vrot.lane.b32.xlu0 %v2894_v30, %s3119_s5 }
  0x5f   :  { %1140 = vrot.lane.b32.xlu1 %v3209_v14, %s3120_s8 }
  0x63   :  { %1126 = vrot.lane.b32.xlu1 %v3217_v15, %s3119_s5 }
  0x67   :  { %1112 = vrot.lane.b32.xlu1 %v3231_v17, %s3117_s4 }
  0x6b   :  { %1138 = vrot.lane.b32.xlu1 %v3217_v15, %s3120_s8 }
  0x6f   :  { %1124 = vrot.lane.b32.xlu1 %v3231_v17, %s3119_s5 }
  0x73   :  { %1110 = vrot.lane.b32.xlu1 %v3239_v19, %s3117_s4 }
  0x77   :  { %1136 = vrot.lane.b32.xlu1 %v3231_v17, %s3120_s8 }
  0x7b   :  { %1122 = vrot.lane.b32.xlu1 %v3239_v19, %s3119_s5 }
  0x7f   :  { %1134 = vrot.lane.b32.xlu1 %v3239_v19, %s3120_s8 }
  0x83   :  { %2880 = vrot.lane.b32.xlu1 %v2879_v26, %s3117_s4 }
  0x87   :  { %2885 = vrot.lane.b32.xlu1 %v2879_v26, %s3119_s5 }
  0x8b   :  { %2890 = vrot.lane.b32.xlu1 %v2879_v26, %s3120_s8  ;;  %v476_v26 = vadd.s32 384, %v3245_v21 }
  0x8d   :  { %vm486_vm8 = vcmp.ge.s32.totalorder %v476_v26, %v478_v6  ;;  %vm496_vm10 = vcmp.lt.s32.totalorder %v476_v26, %v488_v23 }
  0x8e   :  { %vm3388_vm14 = vmand %vm486_vm8, %vm496_vm10 }
  0x8f   :  { %2895 = vrot.lane.b32.xlu1 %v2894_v30, %s3117_s4 }
  0x93   :  { %2905 = vrot.lane.b32.xlu1 %v2894_v30, %s3120_s8  ;;  %v477_v30 = vmul.u32 32, %v3241_v20 }
  0x95   :  { %vm480_vm15 = vcmp.ge.s32.totalorder %v474_v22, %v477_v30  ;;  %vm482_vm2 = vcmp.ge.s32.totalorder %v476_v26, %v477_v30  ;;  %vm479_vm3 = vcmp.ge.s32.totalorder %v3245_v21, %v477_v30  ;;  %vm481_vm10 = vcmp.ge.s32.totalorder %v475_v27, %v477_v30 }
 0x111   :  { %v2838_v34 = vpop.f32.mrf.mxu0 }
 0x112   :  { %v3291_v35 = vadd.f32 %v2838_v34, %v2732_v31  ;;  %v3121_v34 = vmov 1.0  }
 0x113   :  { %v204_v53 = vpop.f32.mrf.mxu0  ;;  %2749 = vmatprep.subr.msk.mxu1 %vm3376_vm9, %v3121_v34  ;;  %2757 = vmatprep.subr.msk.mxu0 %vm3388_vm14, %v3121_v34 }
 0x114   :  { %v2207_v36 = vrot.slane %v3291_v35, %v1622_v32  ;;  %v2126_v37 = vrot.slane %v3291_v35, %v1541_v33  ;;  %v2288_v43 = vrot.slane %v3291_v35, %v1703_v39  ;;  %v2507_v44 = vrot.slane %v3291_v35, %v3300_v40  ;;  %2750 = vmatpush1.msk.msra.mxu1 %vm3397_vm1, %v3121_v34 }
 0x115   :  { %v2426_v47 = vrot.slane %v3291_v35, %v3310_v45  ;;  %v3333_v55 = vadd.f32 %v2732_v31, %v204_v53  ;;  %v2588_v57 = vrot.slane %v3291_v35, %v3329_v52  ;;  %2758 = vmatpush1.msk.msra.mxu0 %vm3405_vm4, %v3121_v34 }
 0x116   :  { %2209 = vrot.lane.b32.xlu0 %v2207_v36, %s3119_s5  ;;  %2128 = vrot.lane.b32.xlu1 %v2126_v37, %s3117_s4  ;;  %v2849_v41 = vpop.f32.mrf.mxu1  ;;  %v487_v37 = vadd.s32 32, %v477_v30 }
 0x117   :  { %v3304_v42 = vadd.f32 %v2849_v41, %v2735_v38  ;;  %v1542_v62 = vrot.slane %v3333_v55, %v1541_v33  ;;  %v1623_v9 = vrot.slane %v3333_v55, %v1622_v32  ;;  %v1704_v12 = vrot.slane %v3333_v55, %v1703_v39 }
 0x118   :  { %v287_v58 = vpop.f32.mrf.mxu1  ;;  %vm490_vm6 = vcmp.lt.s32.totalorder %v474_v22, %v487_v37  ;;  %vm492_vm7 = vcmp.lt.s32.totalorder %v476_v26, %v487_v37  ;;  %vm489_vm8 = vcmp.lt.s32.totalorder %v3245_v21, %v487_v37  ;;  %vm491_vm11 = vcmp.lt.s32.totalorder %v475_v27, %v487_v37 }
 0x119   :  { %v2162_v46 = vrot.slane %v3304_v42, %v1541_v33  ;;  %v2243_v49 = vrot.slane %v3304_v42, %v1622_v32  ;;  %v2324_v50 = vrot.slane %v3304_v42, %v1703_v39  ;;  %v3326_v51 = vrot.slane %v3304_v42, %v3318_v48  ;;  %v2860_v54 = vpop.f32.mrf.mxu0  ;;  %vm3417_vm5 = vmand %vm480_vm15, %vm490_vm6 }
 0x11a   :  { %2290 = vrot.lane.b32.xlu0 %v2288_v43, %s3120_s8  ;;  %2509 = vrot.lane.b32.xlu1 %v2507_v44, %s3119_s5  ;;  %v2462_v56 = vrot.slane %v3304_v42, %v3310_v45  ;;  %v3341_v60 = vadd.f32 %v2735_v38, %v287_v58  ;;  %v2543_v61 = vrot.slane %v3304_v42, %v3300_v40  ;;  %vm3429_vm12 = vmand %vm482_vm2, %vm492_vm7  ;;  %vm521_vm6 = vcmask 130048   ;;  %v1117_v38 = vpop.permute.xlu1 %1116 }
 0x11b   :  { %4437 = vst [vmem:[#allocation20_spill] sm:$0xff] %v3326_v51  ;;  %v370_v59 = vpop.f32.mrf.mxu0  ;;  %v3353_v1 = vadd.f32 %v2860_v54, %v2738_v63  ;;  %v2624_v3 = vrot.slane %v3304_v42, %v3329_v52  ;;  %v2004_v43 = vrot.slane %v3333_v55, %v3329_v52  ;;  %v1923_v44 = vrot.slane %v3333_v55, %v3300_v40  ;;  %vm3438_vm13 = vmand %vm479_vm3, %vm489_vm8 }
 0x11c   :  { %4438 = vst [vmem:[#allocation21_spill] sm:$0xff] %v3341_v60  ;;  %v3349_v0 = vadd.f32 %v2738_v63, %v370_v59  ;;  %v1578_v4 = vrot.slane %v3341_v60, %v1541_v33  ;;  %v1659_v10 = vrot.slane %v3341_v60, %v1622_v32  ;;  %v1740_v13 = vrot.slane %v3341_v60, %v1703_v39  ;;  %vm3444_vm15 = vmand %vm481_vm10, %vm491_vm11 }
 0x11d   :  { %v382_v7 = vmin.f32 %v3353_v1, 20.0  ;;  %v1878_v32 = vrot.slane %v3341_v60, %v3310_v45  ;;  %v1842_v33 = vrot.slane %v3333_v55, %v3310_v45  ;;  %2751 = vmatprep.subr.msk.mxu1 %vm3417_vm5, %v3121_v34  ;;  %2759 = vmatprep.subr.msk.mxu0 %vm3429_vm12, %v3121_v34  ;;  %v2040_v21 = vrot.slane %v3341_v60, %v3329_v52 }
 0x11e   :  { %2428 = vrot.lane.b32.xlu0 %v2426_v47, %s3117_s4  ;;  %2164 = vrot.lane.b32.xlu1 %v2162_v46, %s3117_s4  ;;  %v381_v5 = vmin.f32 %v3349_v0, 20.0  ;;  %vm379_vm2 = vcmp.gt.f32.partialorder %v3349_v0, 20.0  ;;  %vm380_vm3 = vcmp.gt.f32.partialorder %v3353_v1, 20.0  ;;  %v1129_v39 = vpop.permute.xlu1 %1128  ;;  %vm1696_vm7 = vcmask 23568  }
 0x11f   :  { %v385_v18 = vmul.f32 1.442695, %v382_v7  ;;  %2752 = vmatpush1.msk.msra.mxu1 %vm3438_vm13, %v3121_v34  ;;  %2760 = vmatpush1.msk.msra.mxu0 %vm3444_vm15, %v3121_v34  ;;  %vm1777_vm8 = vcmask 31768   ;;  %vm1915_vm10 = vcmask 48168   ;;  %vm1996_vm11 = vcmask 56368  }
 0x120   :  { %v383_v11 = vmul.f32 1.442695, %v381_v5  ;;  %2861 = vmatprep.subr.msk.mxu1 %vm3388_vm14, %v3121_v34  ;;  %2773 = vmatprep.subr.msk.mxu0 %vm3388_vm14, %v3121_v34 }
 0x122   :  { %2245 = vrot.lane.b32.xlu0 %v2243_v49, %s3119_s5  ;;  %2326 = vrot.lane.b32.xlu1 %v2324_v50, %s3120_s8  ;;  %2909 = vpow2.f32 %v383_v11  ;;  %v1959_v49 = vrot.slane %v3341_v60, %v3300_v40  ;;  %v1141_v41 = vpop.permute.xlu1 %1140 }
 0x123   :  { %2911 = vpow2.f32 %v385_v18 }
 0x126   :  { %2464 = vrot.lane.b32.xlu0 %v2462_v56, %s3117_s4  ;;  %2590 = vrot.lane.b32.xlu1 %v2588_v57, %s3120_s8 }
 0x12a   :  { %2545 = vrot.lane.b32.xlu0 %v2543_v61, %s3119_s5  ;;  %1544 = vrot.lane.b32.xlu1 %v1542_v62, %s3117_s4 }
 0x12e   :  { %2626 = vrot.lane.b32.xlu0 %v2624_v3, %s3120_s8  ;;  %1580 = vrot.lane.b32.xlu1 %v1578_v4, %s3117_s4  ;;  %v3472_v3 = vpop.permute.xlu0 %1114 }
 0x12f   :  { %v2910_v50 = vpop.eup %2909 }
 0x130   :  { %v387_v53 = vadd.f32 1.0, %v2910_v50  ;;  %v2912_v54 = vpop.eup %2911 }
 0x131   :  { %v388_v56 = vadd.f32 1.0, %v2912_v54 }
 0x132   :  { %1625 = vrot.lane.b32.xlu0 %v1623_v9, %s3119_s5  ;;  %1661 = vrot.lane.b32.xlu1 %v1659_v10, %s3119_s5  ;;  %2913 = vlog2.f32 %v387_v53  ;;  %v3474_v4 = vpop.permute.xlu0 %2900 }
 0x133   :  { %2915 = vlog2.f32 %v388_v56 }
 0x136   :  { %1706 = vrot.lane.b32.xlu0 %v1704_v12, %s3120_s8  ;;  %1742 = vrot.lane.b32.xlu1 %v1740_v13, %s3120_s8 }
 0x13a   :  { %1880 = vrot.lane.b32.xlu0 %v1878_v32, %s3117_s4  ;;  %1844 = vrot.lane.b32.xlu1 %v1842_v33, %s3117_s4 }
 0x13e   :  { %2006 = vrot.lane.b32.xlu0 %v2004_v43, %s3120_s8  ;;  %1925 = vrot.lane.b32.xlu1 %v1923_v44, %s3119_s5  ;;  %v1127_v43 = vpop.permute.xlu1 %1126 }
 0x13f   :  { %v2914_v52 = vpop.eup %2913 }
 0x140   :  { %v390_v40 = vmul.f32 0.6931472, %v2914_v52  ;;  %v2916_v57 = vpop.eup %2915 }
 0x141   :  { %v392_v59 = vmul.f32 0.6931472, %v2916_v57 }
 0x142   :  { %2042 = vrot.lane.b32.xlu0 %v2040_v21, %s3120_s8  ;;  %1961 = vrot.lane.b32.xlu1 %v1959_v49, %s3119_s5  ;;  %v393_v58 = vsel %vm379_vm2, %v3349_v0, %v390_v40  ;;  %v1113_v44 = vpop.permute.xlu1 %1112  ;;  %vm2280_vm2 = vcmask 89168  }
 0x143   :  { %v394_v61 = vsel %vm380_vm3, %v3353_v1, %v392_v59  ;;  %v435_v62 = vmul.f32 %v393_v58, %v3199_v2  ;;  %v1147_v56 = vsel %vm131_vm0, %v3231_v17, %v1113_v44  ;;  %vm2361_vm3 = vcmask 97368  }
 0x144   :  { %v436_v63 = vmul.f32 %v394_v61, %v3203_v8 }
 0x146   :  { %v1139_v45 = vpop.permute.xlu1 %1138 }
 0x14a   :  { %v1125_v46 = vpop.permute.xlu1 %1124 }
 0x14e   :  { %v1111_v47 = vpop.permute.xlu1 %1110 }
 0x14f   :  { %v1146_v50 = vsel %vm131_vm0, %v3239_v19, %v1111_v47  ;;  %v1148_v19 = vsel %vm131_vm0, %v3217_v15, %v3472_v3 }
 0x152   :  { %v1137_v21 = vpop.permute.xlu1 %1136 }
 0x156   :  { %v1123_v49 = vpop.permute.xlu1 %1122 }
 0x15a   :  { %v1135_v54 = vpop.permute.xlu1 %1134 }
 0x160   :  { %395 = vxpose.xlu0.b32.start [1/2] (short) (narrow) %v393_v58, 32 }
 0x164   :  { %396 = vxpose.xlu0.b32.end [2/2] (short) (narrow) %v394_v61, 32 }
 0x16d   :  { %437 = vxpose.xlu0.b32.start [1/2] (short) (narrow) %v435_v62, 32  ;;  %v3609_v62 = vpop.permute.xlu1 %2880 }
 0x171   :  { %438 = vxpose.xlu0.b32.end [2/2] (short) (narrow) %v436_v63, 32 }
 0x188   :  { %v3476_v5 = vpop.permute.xlu0 %2209 }
 0x18c   :  { %v3478_v0 = vpop.permute.xlu0 %2290 }
 0x190   :  { %v3480_v6 = vpop.permute.xlu0 %2428 }
 0x191   :  { %4455 = vst [vmem:[#allocation22_spill] sm:$0xff] %v3480_v6 }
 0x194   :  { %v3482_v7 = vpop.permute.xlu0 %2245 }
 0x198   :  { %v3484_v1 = vpop.permute.xlu0 %2464 }
 0x199   :  { %4456 = vst [vmem:[#allocation23_spill] sm:$0xff] %v3484_v1 }
 0x19c   :  { %v3486_v9 = vpop.permute.xlu0 %2545 }
 0x19d   :  { %4457 = vst [vmem:[#allocation24_spill] sm:$0xff] %v3486_v9 }
 0x1a0   :  { %v3488_v2 = vpop.permute.xlu0 %2626 }
 0x1a1   :  { %4458 = vst [vmem:[#allocation25_spill] sm:$0xff] %v3488_v2 }
 0x1a4   :  { %v3490_v8 = vpop.permute.xlu0 %1625 }
 0x1a8   :  { %v3492_v10 = vpop.permute.xlu0 %1706 }
 0x1ac   :  { %v3494_v11 = vpop.permute.xlu0 %1880 }
 0x1ad   :  { %4459 = vst [vmem:[#allocation26_spill] sm:$0xff] %v3494_v11 }
 0x1b0   :  { %v3496_v12 = vpop.permute.xlu0 %2006 }
 0x1b1   :  { %4460 = vst [vmem:[#allocation27_spill] sm:$0xff] %v3496_v12 }
 0x1b4   :  { %v3498_v13 = vpop.permute.xlu0 %2042 }
 0x1b5   :  { %4461 = vst [vmem:[#allocation28_spill] sm:$0xff] %v3498_v13 }
 0x1dc   :  { %v411_v18 = vpop.trf.xlu0 }
 0x1dd   :  { %2917 = vrcp.f32 %v411_v18  ;;  %2753 = vmatmul.mubr.msk.f32.vlgmr.msra.gmra.mxu1 %vm521_vm6, %v411_v18  ;;  %2761 = vmatmul.mubr.msk.f32.vlgmr.msra.gmra.mxu0 %vm521_vm6, %v411_v18 }
 0x1de   :  { %604 = vmatprep.mubr.f32.mxu1 %v4410_v16  ;;  %693 = vmatprep.mubr.f32.mxu0 %v4410_v16 }
 0x1df   :  { %2863 = vmatpush1.msk.msra.mxu1 %vm3405_vm4, %v3121_v34  ;;  %2774 = vmatpush1.msk.msra.mxu0 %vm3405_vm4, %v3121_v34 }
 0x1e0   :  { %v412_v22 = vpop.trf.xlu0  ;;  %2775 = vmatprep.subr.msk.mxu0 %vm3429_vm12, %v3121_v34  ;;  %2862 = vmatprep.subr.msk.mxu1 %vm3429_vm12, %v3121_v34 }
 0x1e1   :  { %2919 = vrcp.f32 %v412_v22  ;;  %2754 = vmatmul.mubr.msk.f32.gmra.mxu1 %vm521_vm6, %v412_v22  ;;  %2762 = vmatmul.mubr.msk.f32.gmra.mxu0 %vm521_vm6, %v412_v22 }
 0x1e2   :  { %610 = vmatprep.mubr.f32.mxu1 %v4410_v16  ;;  %699 = vmatprep.mubr.f32.mxu0 %v4410_v16 }
 0x1e3   :  { %2776 = vmatpush1.msk.msra.mxu0 %vm3444_vm15, %v3121_v34  ;;  %2864 = vmatpush1.msk.msra.mxu1 %vm3444_vm15, %v3121_v34 }
 0x1e4   :  { %v413_v23 = vpop.trf.xlu0  ;;  %2765 = vmatprep.subr.msk.mxu1 %vm3376_vm9, %v3121_v34  ;;  %2789 = vmatprep.subr.msk.mxu0 %vm3388_vm14, %v3121_v34  ;;  %vm1155_vm14 = vcmask 785408  }
 0x1e5   :  { %2921 = vrcp.f32 %v413_v23  ;;  %2755 = vmatmul.mubr.msk.f32.gmra.mxu1 %vm521_vm6, %v413_v23  ;;  %2763 = vmatmul.mubr.msk.f32.gmra.mxu0 %vm521_vm6, %v413_v23 }
 0x1e6   :  { %616 = vmatprep.mubr.f32.mxu1 %v4410_v16  ;;  %877 = vmatprep.mubr.f32.mxu0 %v4410_v16 }
 0x1e8   :  { %v414_v26 = vpop.trf.xlu0 }
 0x1e9   :  { %2923 = vrcp.f32 %v414_v26  ;;  %2756 = vmatmul.mubr.msk.f32.gmra.mxu1 %vm521_vm6, %v414_v26 }
 0x1ea   :  { %v2918_v27 = vpop.eup %2917  ;;  %705 = vmatprep.mubr.f32.mxu1 %v4410_v16 }
 0x1eb   :  { %2777 = vmatmul.mubr.msk.f32.vlgmr.msra.gmra.mxu0 %vm521_vm6, %v2918_v27 }
 0x1ec   :  { %883 = vmatprep.mubr.f32.mxu0 %v4410_v16  ;;  %2790 = vmatpush1.msk.msra.mxu0 %vm3405_vm4, %v3121_v34  ;;  %v453_v33 = vpop.trf.xlu0  ;;  %vm1615_vm4 = vcmask 15368  }
 0x1ed   :  { %2764 = vmatmul.mubr.msk.f32.vlgmr.msra.gmra.mxu1 %vm521_vm6, %v414_v26  ;;  %2791 = vmatprep.subr.msk.mxu0 %vm3429_vm12, %v3121_v34  ;;  %vm2077_vm12 = vcmask 64568  }
 0x1ee   :  { %v2920_v30 = vpop.eup %2919  ;;  %2766 = vmatpush1.msk.msra.mxu1 %vm3397_vm1, %v3121_v34  ;;  %788 = vmatprep.mubr.f32.mxu1 %v4410_v16 }
 0x1ef   :  { %2767 = vmatprep.subr.msk.mxu1 %vm3417_vm5, %v3121_v34  ;;  %2778 = vmatmul.mubr.msk.f32.gmra.mxu0 %vm521_vm6, %v2920_v30 }
 0x1f0   :  { %2768 = vmatpush1.msk.msra.mxu1 %vm3438_vm13, %v3121_v34  ;;  %889 = vmatprep.mubr.f32.mxu0 %v4410_v16 }
 0x1f1   :  { %2769 = vmatmul.mubr.msk.f32.vlgmr.msra.gmra.mxu1 %vm521_vm6, %v2918_v27  ;;  %2781 = vmatprep.subr.msk.mxu1 %vm3376_vm9, %v3121_v34  ;;  %vm1150_vm9 = vcmask 523264   ;;  %v1149_v27 = vsel %vm131_vm0, %v3209_v14, %v1117_v38 }
 0x1f2   :  { %v2922_v32 = vpop.eup %2921  ;;  %794 = vmatprep.mubr.f32.mxu1 %v4410_v16  ;;  %2782 = vmatpush1.msk.msra.mxu1 %vm3397_vm1, %v3121_v34  ;;  %v1151_v53 = vsel %vm1150_vm9, %v1146_v50, %v1123_v49  ;;  %v1152_v58 = vsel %vm1150_vm9, %v1147_v56, %v1125_v46  ;;  %v1154_v3 = vsel %vm1150_vm9, %v1149_v27, %v1129_v39  ;;  %v3619_v46 = vpop.permute.xlu1 %2885  ;;  %vm1534_vm1 = vcmask 7168  }
 0x1f3   :  { %2779 = vmatmul.mubr.msk.f32.gmra.mxu0 %vm521_vm6, %v2922_v32  ;;  %2783 = vmatprep.subr.msk.mxu1 %vm3417_vm5, %v3121_v34  ;;  %v1156_v52 = vsel %vm1155_vm14, %v1151_v53, %v1135_v54  ;;  %v1157_v18 = vsel %vm1155_vm14, %v1152_v58, %v1137_v21  ;;  %v1159_v54 = vsel %vm1155_vm14, %v1154_v3, %v1141_v41  ;;  %vm1834_vm5 = vcmask 39968  }
 0x1f4   :  { %895 = vmatprep.mubr.f32.mxu0 %v4410_v16  ;;  %2784 = vmatpush1.msk.msra.mxu1 %vm3438_vm13, %v3121_v34  ;;  %vm2118_vm13 = vcmask 72768  }
 0x1f5   :  { %2770 = vmatmul.mubr.msk.f32.gmra.mxu1 %vm521_vm6, %v2920_v30  ;;  %2792 = vmatpush1.msk.msra.mxu0 %vm3444_vm15, %v3121_v34  ;;  %v454_v34 = vpop.trf.xlu0  ;;  %v1153_v30 = vsel %vm1150_vm9, %v1148_v19, %v1127_v43  ;;  %vm2199_vm15 = vcmask 80968  }
 0x1f6   :  { %v2924_v31 = vpop.eup %2923  ;;  %800 = vmatprep.mubr.f32.mxu1 %v4410_v16  ;;  %v1158_v21 = vsel %vm1155_vm14, %v1153_v30, %v1139_v45 }
 0x1f7   :  { %2780 = vmatmul.mubr.msk.f32.gmra.mxu0 %vm521_vm6, %v2924_v31 }
 0x1f8   :  { %1067 = vmatprep.mubr.f32.mxu0 %v4410_v16 }
 0x1f9   :  { %2771 = vmatmul.mubr.msk.f32.gmra.mxu1 %vm521_vm6, %v2922_v32  ;;  %v455_v36 = vpop.trf.xlu0 }
 0x1fa   :  { %806 = vmatprep.mubr.f32.mxu1 %v4410_v16 }
 0x1fb   :  { %2793 = vmatmul.mubr.msk.f32.vlgmr.msra.gmra.mxu0 %vm521_vm6, %v453_v33 }
 0x1fc   :  { %1073 = vmatprep.mubr.f32.mxu0 %v4410_v16 }
 0x1fd   :  { %2772 = vmatmul.mubr.msk.f32.gmra.mxu1 %vm521_vm6, %v2924_v31  ;;  %v456_v37 = vpop.trf.xlu0 }
 0x1fe   :  { %978 = vmatprep.mubr.f32.mxu1 %v4410_v16 }
 0x1ff   :  { %2794 = vmatmul.mubr.msk.f32.gmra.mxu0 %vm521_vm6, %v454_v34 }
 0x200   :  { %1079 = vmatprep.mubr.f32.mxu0 %v4410_v16 }
 0x201   :  { %2785 = vmatmul.mubr.msk.f32.vlgmr.msra.gmra.mxu1 %vm521_vm6, %v453_v33 }
 0x202   :  { %984 = vmatprep.mubr.f32.mxu1 %v4410_v16 }
 0x203   :  { %2795 = vmatmul.mubr.msk.f32.gmra.mxu0 %vm521_vm6, %v455_v36 }
 0x204   :  { %1085 = vmatprep.mubr.f32.mxu0 %v4410_v16 }
 0x205   :  { %2786 = vmatmul.mubr.msk.f32.gmra.mxu1 %vm521_vm6, %v454_v34 }
 0x206   :  { %990 = vmatprep.mubr.f32.mxu1 %v4410_v16 }
 0x207   :  { %2796 = vmatmul.mubr.msk.f32.gmra.mxu0 %vm521_vm6, %v456_v37 }
 0x208   :  { %1457 = vmatprep.mubr.f32.mxu0 %v4410_v16 }
 0x209   :  { %2787 = vmatmul.mubr.msk.f32.gmra.mxu1 %vm521_vm6, %v455_v36 }
 0x20a   :  { %996 = vmatprep.mubr.f32.mxu1 %v4410_v16 }
 0x20d   :  { %2788 = vmatmul.mubr.msk.f32.gmra.mxu1 %vm521_vm6, %v456_v37  ;;  %vm2418_vm6 = vcmask 105568  }
 0x20e   :  { %1368 = vmatprep.mubr.f32.mxu1 %v4410_v16 }
 0x29d   :  { %v600_v40 = vpop.f32.mrf.mxu1  ;;  %v689_v57 = vpop.f32.mrf.mxu0 }
 0x29e   :  { %v1212_v63 = vmul.f32 %v1156_v52, %v600_v40 }
 0x29f   :  { %v602_v59 = vpop.f32.mrf.mxu1  ;;  %v691_v61 = vpop.f32.mrf.mxu0 }
 0x2a0   :  { %v1213_v22 = vmul.f32 %v1156_v52, %v602_v59  ;;  %v1228_v33 = vmul.f32 1.442695, %v1212_v63 }
 0x2a1   :  { %v606_v17 = vpop.f32.mrf.mxu1  ;;  %v695_v23 = vpop.f32.mrf.mxu0 }
 0x2a2   :  { %v1216_v26 = vmul.f32 %v1157_v18, %v606_v17  ;;  %v1230_v37 = vmul.f32 1.442695, %v1213_v22  ;;  %2925 = vpow2.f32 %v1228_v33  ;;  %v3625_v22 = vpop.permute.xlu1 %2890  ;;  %v1218_v27 = vmul.f32 %v1157_v18, %v695_v23 }
 0x2a3   :  { %v608_v32 = vpop.f32.mrf.mxu1  ;;  %v697_v31 = vpop.f32.mrf.mxu0  ;;  %v2882_v23 = vunpack.i.l.bf16 %v3609_v62 }
 0x2a4   :  { %v1217_v34 = vmul.f32 %v1157_v18, %v608_v32  ;;  %v1219_v36 = vmul.f32 %v1157_v18, %v697_v31  ;;  %v1236_v47 = vmul.f32 1.442695, %v1216_v26  ;;  %2927 = vpow2.f32 %v1230_v37 }
 0x2a5   :  { %v612_v44 = vpop.f32.mrf.mxu1  ;;  %v701_v15 = vpop.f32.mrf.mxu0  ;;  %v1215_v31 = vmul.f32 %v1156_v52, %v691_v61 }
 0x2a6   :  { %v1238_v49 = vmul.f32 1.442695, %v1217_v34  ;;  %v1220_v50 = vmul.f32 %v1158_v21, %v612_v44  ;;  %v1242_v43 = vmul.f32 1.442695, %v1219_v36  ;;  %2929 = vpow2.f32 %v1236_v47 }
 0x2a7   :  { %v614_v14 = vpop.f32.mrf.mxu1  ;;  %v703_v38 = vpop.f32.mrf.mxu0  ;;  %v1222_v19 = vmul.f32 %v1158_v21, %v701_v15  ;;  %v1214_v36 = vmul.f32 %v1156_v52, %v689_v57  ;;  %v1234_v61 = vmul.f32 1.442695, %v1215_v31  ;;  %v2883_v52 = vunpack.i.h.bf16 %v3609_v62 }
 0x2a8   :  { %v1221_v53 = vmul.f32 %v1158_v21, %v614_v14  ;;  %v1223_v56 = vmul.f32 %v1158_v21, %v703_v38  ;;  %2931 = vpow2.f32 %v1238_v49  ;;  %v1244_v59 = vmul.f32 1.442695, %v1220_v50  ;;  %v2896_v49 = vpop.permute.xlu1 %2895 }
 0x2a9   :  { %v618_v40 = vpop.f32.mrf.mxu1  ;;  %2933 = vpow2.f32 %v1242_v43  ;;  %v1248_v37 = vmul.f32 1.442695, %v1222_v19  ;;  %v1240_v21 = vmul.f32 1.442695, %v1218_v27  ;;  %v1232_v57 = vmul.f32 1.442695, %v1214_v36 }
 0x2aa   :  { %v1246_v58 = vmul.f32 1.442695, %v1221_v53  ;;  %v1224_v39 = vmul.f32 %v1159_v54, %v618_v40  ;;  %v1250_v41 = vmul.f32 1.442695, %v1223_v56  ;;  %v2887_v53 = vunpack.i.l.bf16 %v3619_v46 }
 0x2ab   :  { %v620_v63 = vpop.f32.mrf.mxu1  ;;  %v3623_v45 = vpop.f32.mrf.mxu0  ;;  %v1203_v62 = vsel %vm131_vm0, %v3259_v25, %v2882_v23  ;;  %v2898_v19 = vunpack.i.h.bf16 %v2896_v49  ;;  %v2892_v27 = vunpack.i.l.bf16 %v3625_v22  ;;  %v2893_v31 = vunpack.i.h.bf16 %v3625_v22 }
 0x2ac   :  { %v1252_v17 = vmul.f32 1.442695, %v1224_v39  ;;  %v1225_v26 = vmul.f32 %v1159_v54, %v620_v63  ;;  %2935 = vpow2.f32 %v1246_v58  ;;  %v2888_v58 = vunpack.i.h.bf16 %v3619_v46  ;;  %v2906_v25 = vpop.permute.xlu1 %2905 }
 0x2ad   :  { %v707_v30 = vpop.f32.mrf.mxu1  ;;  %v3627_v32 = vpop.f32.mrf.mxu0  ;;  %v1207_v46 = vsel %vm1150_vm9, %v1203_v62, %v2887_v53 }
 0x2ae   :  { %2937 = vpow2.f32 %v1252_v17  ;;  %v1254_v33 = vmul.f32 1.442695, %v1225_v26  ;;  %v1226_v34 = vmul.f32 %v1159_v54, %v707_v30 }
 0x2af   :  { %2939 = vpow2.f32 %v1244_v59  ;;  %v709_v44 = vpop.f32.mrf.mxu1  ;;  %v3629_v15 = vpop.f32.mrf.mxu0  ;;  %v1202_v59 = vsel %vm131_vm0, %v3256_v24, %v2883_v52 }
 0x2b0   :  { %2941 = vpow2.f32 %v1254_v33  ;;  %v1256_v3 = vmul.f32 1.442695, %v1226_v34  ;;  %v1227_v47 = vmul.f32 %v1159_v54, %v709_v44  ;;  %v3639_v43 = vpop.eup %2925  ;;  %v2897_v54 = vunpack.i.l.bf16 %v2896_v49 }
 0x2b1   :  { %2943 = vpow2.f32 %v1250_v41  ;;  %v3631_v18 = vpop.f32.mrf.mxu1  ;;  %v3635_v14 = vpop.f32.mrf.mxu0  ;;  %v2902_v41 = vunpack.i.l.bf16 %v3474_v4  ;;  %v1206_v36 = vsel %vm1150_vm9, %v1202_v59, %v2888_v58 }
 0x2b2   :  { %2945 = vpow2.f32 %v1256_v3  ;;  %v1258_v50 = vmul.f32 1.442695, %v1227_v47  ;;  %v3644_v40 = vpop.eup %2927  ;;  %v1201_v24 = vsel %vm131_vm0, %v3278_v29, %v2897_v54  ;;  %v1200_v3 = vsel %vm131_vm0, %v3275_v28, %v2898_v19 }
 0x2b3   :  { %2947 = vpow2.f32 %v1248_v37  ;;  %v3637_v38 = vpop.f32.mrf.mxu1  ;;  %4462 = vst [vmem:[#allocation29_spill] sm:$0xff] %v3644_v40  ;;  %v3649_v39 = vpop.eup %2929  ;;  %v2903_v37 = vunpack.i.h.bf16 %v3474_v4  ;;  %v2907_v47 = vunpack.i.l.bf16 %v2906_v25  ;;  %v1205_v22 = vsel %vm1150_vm9, %v1201_v24, %v2902_v41 }
 0x2b4   :  { %2949 = vpow2.f32 %v1258_v50  ;;  %v3653_v63 = vpop.f32.mrf.mxu0  ;;  %v1211_v29 = vsel %vm1155_vm14, %v1207_v46, %v2892_v27  ;;  %v2908_v50 = vunpack.i.h.bf16 %v2906_v25  ;;  %v1210_v52 = vsel %vm1155_vm14, %v1206_v36, %v2893_v31 }
 0x2b5   :  { %2951 = vpow2.f32 %v1240_v21  ;;  %v3642_v56 = vpop.f32.mrf.mxu1  ;;  %v3655_v26 = vpop.eup %2931  ;;  %v1204_v28 = vsel %vm1150_vm9, %v1200_v3, %v2903_v37  ;;  %v1209_v59 = vsel %vm1155_vm14, %v1205_v22, %v2907_v47  ;;  %vm2499_vm9 = vcmask 113768  }
 0x2b6   :  { %2953 = vpow2.f32 %v1234_v61  ;;  %v3659_v30 = vpop.eup %2933  ;;  %v893_v21 = vpop.f32.mrf.mxu0  ;;  %v1265_v46 = vsub.f32 %v3655_v26, %v1209_v59  ;;  %v1208_v36 = vsel %vm1155_vm14, %v1204_v28, %v2908_v50  ;;  %v1264_v37 = vsub.f32 %v3649_v39, %v1209_v59 }
 0x2b7   :  { %2955 = vpow2.f32 %v1232_v57  ;;  %v798_v17 = vpop.f32.mrf.mxu1  ;;  %4463 = vst [vmem:[#allocation30_spill] sm:$0xff] %v3659_v30  ;;  %v1261_v47 = vsub.f32 %v3644_v40, %v1208_v36  ;;  %vm2580_vm14 = vcmask 121968  }
 0x2b8   :  { %v897_v19 = vpop.f32.mrf.mxu0  ;;  %v1281_v1 = vmul.f32 %v1265_v46, %v798_v17 }
 0x2b9   :  { %v802_v33 = vpop.f32.mrf.mxu1  ;;  %v3665_v34 = vpop.eup %2935 }
 0x2ba   :  { %4464 = vst [vmem:[#allocation31_spill] sm:$0xff] %v3665_v34  ;;  %v1269_v54 = vsub.f32 %v3665_v34, %v1210_v52  ;;  %v899_v9 = vpop.f32.mrf.mxu0 }
 0x2bb   :  { %v3669_v44 = vpop.eup %2937  ;;  %v804_v23 = vpop.f32.mrf.mxu1 }
 0x2bc   :  { %v3673_v49 = vpop.eup %2939  ;;  %v1272_v57 = vsub.f32 %v3669_v44, %v1211_v29  ;;  %v1285_v12 = vmul.f32 %v1269_v54, %v804_v23  ;;  %v1280_v23 = vmul.f32 %v1264_v37, %v3642_v56  ;;  %v1509_v34 = vmul.f32 0.0, %v3669_v44 }
 0x2bd   :  { %v3677_v61 = vpop.eup %2941  ;;  %v808_v4 = vpop.f32.mrf.mxu1  ;;  %v1268_v27 = vsub.f32 %v3673_v49, %v1210_v52 }
 0x2be   :  { %4465 = vst [vmem:[#allocation32_spill] sm:$0xff] %v3677_v61  ;;  %v3681_v53 = vpop.eup %2943  ;;  %v1273_v62 = vsub.f32 %v3677_v61, %v1211_v29  ;;  %v1288_v16 = vmul.f32 %v1272_v57, %v808_v4  ;;  %v1267_v57 = vsub.f32 %v3659_v30, %v1209_v59 }
 0x2bf   :  { %4466 = vst [vmem:[#allocation33_spill] sm:$0xff] %v3681_v53  ;;  %v3686_v58 = vpop.eup %2945  ;;  %v810_v41 = vpop.f32.mrf.mxu1  ;;  %v1271_v22 = vsub.f32 %v3681_v53, %v1210_v52  ;;  %v1284_v28 = vmul.f32 %v1268_v27, %v802_v33 }
 0x2c0   :  { %v3690_v25 = vpop.eup %2947  ;;  %v1289_v31 = vmul.f32 %v1273_v62, %v810_v41  ;;  %v1274_v3 = vsub.f32 %v3686_v58, %v1211_v29  ;;  %v1260_v41 = vsub.f32 %v3639_v43, %v1208_v36 }
 0x2c1   :  { %v3693_v24 = vpop.eup %2949  ;;  %v1270_v50 = vsub.f32 %v3690_v25, %v1210_v52  ;;  %v1277_v52 = vmul.f32 %v1261_v47, %v3637_v38  ;;  %v1287_v33 = vmul.f32 %v1271_v22, %v893_v21  ;;  %v116_v38 = vld [vmem:[#allocation8 + $0x8] sm:$0xff] }
 0x2c2   :  { %4467 = vst [vmem:[#allocation34_spill] sm:$0xff] %v3693_v24  ;;  %v3698_v2 = vpop.eup %2951  ;;  %v1275_v13 = vsub.f32 %v3693_v24, %v1211_v29  ;;  %1328 = vmatprep.subr.mxu1 %v1289_v31  ;;  %v1290_v54 = vmul.f32 %v1274_v3, %v897_v19  ;;  %v1276_v27 = vmul.f32 %v1260_v41, %v3631_v18  ;;  %v4469_v18 = vmov 0.0  }
 0x2c3   :  { %v3703_v62 = vpop.eup %2953  ;;  %1329 = vmatpush1.msra.mxu1 %v1288_v16  ;;  %v1266_v29 = vsub.f32 %v3698_v2, %v1209_v59  ;;  %v2091_v53 = vmul.f32 0.0, %v3698_v2 }
 0x2c4   :  { %4468 = vst [vmem:[#allocation35_spill] sm:$0xff] %v3703_v62  ;;  %v3707_v4 = vpop.eup %2955  ;;  %v1291_v11 = vmul.f32 %v1275_v13, %v899_v9  ;;  %1330 = vmatprep.subr.mxu1 %v1285_v12  ;;  %v1263_v31 = vsub.f32 %v3703_v62, %v1208_v36  ;;  %v1286_v9 = vmul.f32 %v1270_v50, %v3653_v63  ;;  %v115_v12 = vld [vmem:[#allocation8] sm:$0xff]  ;;  %v1069_v63 = vpop.f32.mrf.mxu0 }
 0x2c5   :  { %1331 = vmatpush1.msra.mxu1 %v1284_v28  ;;  %v1262_v16 = vsub.f32 %v3707_v4, %v1208_v36  ;;  %v1283_v13 = vmul.f32 %v1267_v57, %v3635_v14  ;;  %v1282_v56 = vmul.f32 %v1266_v29, %v3629_v15  ;;  %v980_v15 = vpop.f32.mrf.mxu1  ;;  %v1500_v28 = vsub.s32 0, %v3241_v20 }
 0x2c6   :  { %1332 = vmatprep.subr.mxu1 %v1281_v1  ;;  %1417 = vmatprep.subr.mxu0 %v1291_v11  ;;  %v1279_v1 = vmul.f32 %v1263_v31, %v3627_v32  ;;  %v117_v32 = vld [vmem:[#allocation8 + $0x10] sm:$0xff]  ;;  %v3735_v21 = vpop.f32.mrf.mxu0 }
 0x2c7   :  { %1333 = vmatpush1.msra.mxu1 %v1280_v23  ;;  %1418 = vmatpush1.msra.mxu0 %v1290_v54  ;;  %v1278_v11 = vmul.f32 %v1262_v16, %v3623_v45  ;;  %v118_v45 = vld [vmem:[#allocation8 + $0x18] sm:$0xff]  ;;  %v982_v14 = vpop.f32.mrf.mxu1  ;;  %v1501_v23 = vrot.slane %v3333_v55, %v1500_v28  ;;  %v1506_v16 = vmul.f32 0.0, %v3639_v43 }
 0x2c8   :  { %1334 = vmatprep.subr.mxu1 %v1277_v52  ;;  %1419 = vmatprep.subr.mxu0 %v1287_v33  ;;  %v1075_v19 = vpop.f32.mrf.mxu0 }
 0x2c9   :  { %1335 = vmatpush1.msra.mxu1 %v1276_v27  ;;  %1420 = vmatpush1.msra.mxu0 %v1286_v9  ;;  %v986_v17 = vpop.f32.mrf.mxu1  ;;  %v3759_v27 = vrot.slane %v3333_v55, %v3318_v48 }
 0x2ca   :  { %2801 = vmatmul.mubr.msk.f32.vlgmr.msra.gmra.mxu1 %vm131_vm0, %v115_v12  ;;  %1421 = vmatprep.subr.mxu0 %v1283_v13  ;;  %v3739_v36 = vpop.f32.mrf.mxu0 }
 0x2cb   :  { %1422 = vmatpush1.msra.mxu0 %v1282_v56  ;;  %1374 = vmatprep.mubr.f32.mxu1 %v4469_v18  ;;  %v3737_v59 = vpop.f32.mrf.mxu1 }
 0x2cc   :  { %1423 = vmatprep.subr.mxu0 %v1279_v1  ;;  %v1081_v3 = vpop.f32.mrf.mxu0 }
 0x2cd   :  { %1424 = vmatpush1.msra.mxu0 %v1278_v11  ;;  %v992_v46 = vpop.f32.mrf.mxu1 }
 0x2ce   :  { %2802 = vmatmul.mubr.msk.f32.gmra.mxu1 %vm131_vm0, %v116_v38  ;;  %2805 = vmatmul.mubr.msk.f32.vlgmr.msra.gmra.mxu0 %vm131_vm0, %v115_v12  ;;  %v3743_v22 = vpop.f32.mrf.mxu0  ;;  %v1517_v12 = vrot.slane %v3341_v60, %v1500_v28 }
 0x2cf   :  { %1380 = vmatprep.mubr.f32.mxu1 %v4469_v18  ;;  %1463 = vmatprep.mubr.f32.mxu0 %v4469_v18  ;;  %v3741_v37 = vpop.f32.mrf.mxu1 }
 0x2d0   :  { %v1087_v50 = vpop.f32.mrf.mxu0 }
 0x2d1   :  { %v998_v47 = vpop.f32.mrf.mxu1 }
 0x2d2   :  { %2803 = vmatmul.mubr.msk.f32.gmra.mxu1 %vm131_vm0, %v117_v32  ;;  %2806 = vmatmul.mubr.msk.f32.gmra.mxu0 %vm131_vm0, %v116_v38  ;;  %v3751_v54 = vpop.f32.mrf.mxu0 }
 0x2d3   :  { %1386 = vmatprep.mubr.f32.mxu1 %v4469_v18  ;;  %1469 = vmatprep.mubr.f32.mxu0 %v4469_v18  ;;  %v3745_v41 = vpop.f32.mrf.mxu1 }
 0x2d6   :  { %2804 = vmatmul.mubr.msk.f32.gmra.mxu1 %vm131_vm0, %v118_v45  ;;  %2807 = vmatmul.mubr.msk.f32.gmra.mxu0 %vm131_vm0, %v117_v32  ;;  %v2085_v32 = vrot.slane %v3291_v35, %v1500_v28 }
 0x2d7   :  { %1475 = vmatprep.mubr.f32.mxu0 %v4469_v18 }
 0x2da   :  { %2808 = vmatmul.mubr.msk.f32.gmra.mxu0 %vm131_vm0, %v118_v45  ;;  %v1507_v45 = vmul.f32 0.0, %v3649_v39 }
 0x38a   :  { %v1370_v57 = vpop.f32.mrf.mxu1 }
 0x38b   :  { %v3748_v29 = vmul.f32 %v1370_v57, %v980_v15  ;;  %v2090_v57 = vmul.f32 0.0, %v3707_v4 }
 0x38c   :  { %v1372_v31 = vpop.f32.mrf.mxu1 }
 0x38d   :  { %v3753_v52 = vmul.f32 %v1372_v31, %v982_v14  ;;  %v1502_v33 = vmul.f32 %v1501_v23, %v3748_v29 }
 0x38e   :  { %v1376_v9 = vpop.f32.mrf.mxu1  ;;  %v1459_v20 = vpop.f32.mrf.mxu0 }
 0x38f   :  { %4470 = vst [vmem:[#allocation36_spill] sm:$0xff] %v3753_v52  ;;  %v3762_v13 = vmul.f32 %v1376_v9, %v986_v17  ;;  %v3764_v56 = vmul.f32 %v1459_v20, %v1069_v63  ;;  %v1510_v1 = vadd.f32 %v1506_v16, %v1502_v33  ;;  %v3768_v11 = vmul.f32 %v3759_v27, %v3753_v52 }
 0x390   :  { %v1378_v18 = vpop.f32.mrf.mxu1  ;;  %v1461_v38 = vpop.f32.mrf.mxu0  ;;  %v2101_v52 = vrot.slane %v3304_v42, %v1500_v28 }
 0x391   :  { %4471 = vst [vmem:[#allocation37_spill] sm:$0xff] %v3768_v11  ;;  %1555 = vrot.lane.b32.xlu1 %v1510_v1, %s3117_s4  ;;  %v1503_v55 = vmul.f32 %v1501_v23, %v3762_v13  ;;  %v3774_v15 = vmul.f32 %v1517_v12, %v1510_v1  ;;  %v2086_v17 = vmul.f32 %v2085_v32, %v3764_v56 }
 0x392   :  { %v1382_v14 = vpop.f32.mrf.mxu1  ;;  %v1465_v63 = vpop.f32.mrf.mxu0 }
 0x393   :  { %v3778_v31 = vmul.f32 %v1382_v14, %v992_v46  ;;  %v3780_v33 = vmul.f32 %v1465_v63, %v1075_v19  ;;  %v1511_v16 = vadd.f32 %v1507_v45, %v1503_v55  ;;  %v2094_v6 = vadd.f32 %v2090_v57, %v2086_v17 }
 0x394   :  { %v1384_v9 = vpop.f32.mrf.mxu1  ;;  %v1467_v20 = vpop.f32.mrf.mxu0  ;;  %v1508_v46 = vmul.f32 0.0, %v3673_v49 }
 0x395   :  { %v1519_v24 = vmul.f32 %v1517_v12, %v1511_v16  ;;  %v2087_v1 = vmul.f32 %v2085_v32, %v3780_v33  ;;  %v2102_v62 = vmul.f32 %v2101_v52, %v2094_v6  ;;  %v1504_v61 = vmul.f32 %v1501_v23, %v3778_v31 }
 0x396   :  { %v1388_v30 = vpop.f32.mrf.mxu1  ;;  %v1471_v51 = vpop.f32.mrf.mxu0 }
 0x397   :  { %v3787_v19 = vmul.f32 %v1388_v30, %v998_v47  ;;  %v3789_v55 = vmul.f32 %v1471_v51, %v1081_v3  ;;  %v1525_v45 = vsel %vm131_vm0, %v1519_v24, 0.0  ;;  %v2095_v42 = vadd.f32 %v2091_v53, %v2087_v1 }
 0x398   :  { %v1473_v28 = vpop.f32.mrf.mxu0  ;;  %1526 = vadd.xlane.f32.xlu0 %v1525_v45  ;;  %v1512_v14 = vadd.f32 %v1508_v46, %v1504_v61  ;;  %v1390_v63 = vpop.f32.mrf.mxu1  ;;  %v2092_v30 = vmul.f32 0.0, %v3690_v25  ;;  %v2093_v53 = vmul.f32 0.0, %v3686_v58  ;;  %v3801_v61 = vmul.f32 %v1378_v18, %v3737_v59 }
 0x399   :  { %v2103_v17 = vmul.f32 %v2101_v52, %v2095_v42  ;;  %v1505_v57 = vmul.f32 %v1501_v23, %v3787_v19  ;;  %v2088_v40 = vmul.f32 %v2085_v32, %v3789_v55  ;;  %v3804_v47 = vmul.f32 %v1384_v9, %v3741_v37 }
 0x39a   :  { %v1477_v11 = vpop.f32.mrf.mxu0  ;;  %v1520_v60 = vmul.f32 %v1517_v12, %v1512_v14  ;;  %v3807_v23 = vmul.f32 %v1390_v63, %v3745_v41  ;;  %v3817_v59 = vmul.f32 %v1473_v28, %v3743_v22 }
 0x39b   :  { %v3796_v51 = vmul.f32 %v1477_v11, %v1087_v50  ;;  %v2109_v24 = vsel %vm131_vm0, %v2103_v17, 0.0  ;;  %v1513_v3 = vadd.f32 %v1509_v34, %v1505_v57  ;;  %v2096_v46 = vadd.f32 %v2092_v30, %v2088_v40 }
 0x39c   :  { %v1479_v1 = vpop.f32.mrf.mxu0  ;;  %2110 = vadd.xlane.f32.xlu0 %v2109_v24  ;;  %v3810_v50 = vmul.f32 %v1461_v38, %v3735_v21  ;;  %v3813_v11 = vmul.f32 %v1467_v20, %v3739_v36  ;;  %v2369_v40 = vrot.slane %v3291_v35, %v3318_v48  ;;  %v3826_v21 = vmul.f32 %v3759_v27, %v3801_v61  ;;  %v3854_v20 = vpop.permute.xlu1 %2128 }
 0x39d   :  { %v2089_v34 = vmul.f32 %v2085_v32, %v3796_v51  ;;  %v1521_v45 = vmul.f32 %v1517_v12, %v1513_v3  ;;  %v3820_v37 = vmul.f32 %v1479_v1, %v3751_v54  ;;  %v2104_v41 = vmul.f32 %v2101_v52, %v2096_v46 }
 0x39e   :  { %v3830_v36 = vmul.f32 %v3759_v27, %v3804_v47  ;;  %v3834_v22 = vmul.f32 %v3759_v27, %v3807_v23  ;;  %v3837_v54 = vmul.f32 %v2369_v40, %v3810_v50  ;;  %v3840_v38 = vmul.f32 %v2369_v40, %v3813_v11 }
 0x39f   :  { %v2097_v18 = vadd.f32 %v2093_v53, %v2089_v34  ;;  %v3843_v35 = vmul.f32 %v2369_v40, %v3817_v59  ;;  %v3846_v32 = vmul.f32 %v2369_v40, %v3820_v37  ;;  %v1522_v27 = vsel %vm131_vm0, %v3774_v15, 0.0 }
 0x3a0   :  { %v3856_v28 = vpop.permute.xlu1 %2509 }
 0x3a1   :  { %v2105_v12 = vmul.f32 %v2101_v52, %v2097_v18  ;;  %v2106_v52 = vsel %vm131_vm0, %v2102_v62, 0.0 }
 0x3a3   :  { %v2115_v9 = vsel %vm131_vm0, %v2105_v12, 0.0 }
 0x3a4   :  { %2116 = vadd.xlane.f32.xlu0 %v2115_v9  ;;  %v3859_v63 = vpop.permute.xlu1 %2164 }
 0x3a8   :  { %v3862_v17 = vpop.permute.xlu1 %2326 }
 0x3ac   :  { %v3864_v15 = vpop.permute.xlu1 %2590 }
 0x3b5   :  { %1523 = vadd.xlane.f32.xlu1 %v1522_v27  ;;  %v2131_v27 = vmul.f32 %v3854_v20, %v3764_v56 }
 0x3c6   :  { %1557 = vrot.lane.b32.xlu1 %v1511_v16, %s3117_s4  ;;  %v1545_v16 = vpop.permute.xlu1 %1544 }
 0x3ca   :  { %2139 = vrot.lane.b32.xlu1 %v2094_v6, %s3117_s4  ;;  %v3866_v57 = vpop.permute.xlu1 %1580 }
 0x3ce   :  { %v3868_v6 = vpop.permute.xlu1 %1661 }
 0x3d2   :  { %v3871_v30 = vpop.permute.xlu1 %1742 }
 0x3d6   :  { %v3874_v24 = vpop.permute.xlu1 %1844 }
 0x3ee   :  { %2107 = vadd.xlane.f32.xlu1 %v2106_v52 }
 0x3ff   :  { %1559 = vrot.lane.b32.xlu1 %v1512_v14, %s3117_s4  ;;  %v1528_v14 = vsel %vm131_vm0, %v1520_v60, 0.0  ;;  %v1548_v60 = vmul.f32 %v1545_v16, %v3762_v13 }
 0x403   :  { %2141 = vrot.lane.b32.xlu1 %v2095_v42, %s3117_s4  ;;  %v3876_v42 = vpop.permute.xlu1 %1925 }
 0x407   :  { %v3878_v53 = vpop.permute.xlu1 %1961 }
 0x40b   :  { %v1556_v1 = vpop.permute.xlu1 %1555 }
 0x421   :  { %v1527_v62 = vpop.xlane.xlu0 %1526 }
 0x422   :  { %1536 = vst.msk [vmem:[#allocation2 + $0x8] sm:$0xff] %vm1534_vm1, %v1527_v62 }
 0x427   :  { %1529 = vadd.xlane.f32.xlu1 %v1528_v14 }
 0x438   :  { %1561 = vrot.lane.b32.xlu1 %v1513_v3, %s3117_s4 }
 0x43c   :  { %2143 = vrot.lane.b32.xlu1 %v2096_v46, %s3117_s4 }
 0x43e   :  { %v1524_v34 = vpop.xlane.xlu1 %1523 }
 0x43f   :  { %1535 = vst.msk [vmem:[#allocation2] sm:$0xff] %vm1534_vm1, %v1524_v34  ;;  %v1531_v34 = vsel %vm131_vm0, %v1521_v45, 0.0 }
 0x442   :  { %v1558_v40 = vpop.permute.xlu1 %1557 }
 0x443   :  { %v1568_v12 = vmul.f32 %v3649_v39, %v1558_v40  ;;  %v2112_v40 = vsel %vm131_vm0, %v2104_v41, 0.0 }
 0x445   :  { %v1572_v62 = vadd.f32 %v1568_v12, %v1548_v60  ;;  %v1547_v12 = vmul.f32 %v1545_v16, %v3748_v29 }
 0x446   :  { %v2140_v9 = vpop.permute.xlu1 %2139 }
 0x447   :  { %v2151_v52 = vmul.f32 %v3707_v4, %v2140_v9  ;;  %v1584_v3 = vmul.f32 %v3866_v57, %v1572_v62  ;;  %v1567_v9 = vmul.f32 %v3639_v43, %v1556_v1 }
 0x449   :  { %v2155_v14 = vadd.f32 %v2151_v52, %v2131_v27  ;;  %v1571_v60 = vadd.f32 %v1567_v9, %v1547_v12 }
 0x44b   :  { %2220 = vrot.lane.b32.xlu0 %v2155_v14, %s3117_s4  ;;  %v2167_v46 = vmul.f32 %v3859_v63, %v2155_v14  ;;  %v1583_v14 = vmul.f32 %v3866_v57, %v1571_v60 }
 0x44f   :  { %1593 = vrot.lane.b32.xlu0 %v1584_v3, %s3120_s8  ;;  %v1549_v3 = vmul.f32 %v1545_v16, %v3778_v31 }
 0x453   :  { %2175 = vrot.lane.b32.xlu0 %v2167_v46, %s3120_s8  ;;  %v2132_v46 = vmul.f32 %v3854_v20, %v3780_v33 }
 0x460   :  { %1532 = vadd.xlane.f32.xlu1 %v1531_v34 }
 0x464   :  { %2113 = vadd.xlane.f32.xlu1 %v2112_v40 }
 0x475   :  { %2145 = vrot.lane.b32.xlu1 %v2097_v18, %s3117_s4 }
 0x477   :  { %v3898_v27 = vpop.xlane.xlu1 %2107 }
 0x479   :  { %1636 = vrot.lane.b32.xlu1 %v1571_v60, %s3117_s4  ;;  %v1550_v60 = vmul.f32 %v1545_v16, %v3787_v19 }
 0x47b   :  { %v1560_v52 = vpop.permute.xlu1 %1559 }
 0x47c   :  { %v1569_v45 = vmul.f32 %v3673_v49, %v1560_v52 }
 0x47d   :  { %1591 = vrot.lane.b32.xlu1 %v1583_v14, %s3120_s8 }
 0x47e   :  { %v1573_v1 = vadd.f32 %v1569_v45, %v1549_v3 }
 0x47f   :  { %v2142_v41 = vpop.permute.xlu1 %2141 }
 0x480   :  { %v2152_v18 = vmul.f32 %v3698_v2, %v2142_v41  ;;  %v1585_v40 = vmul.f32 %v3866_v57, %v1573_v1  ;;  %v2133_v41 = vmul.f32 %v3854_v20, %v3789_v55 }
 0x481   :  { %1638 = vrot.lane.b32.xlu1 %v1572_v62, %s3117_s4 }
 0x482   :  { %v2156_v34 = vadd.f32 %v2152_v18, %v2132_v46 }
 0x484   :  { %v2168_v9 = vmul.f32 %v3859_v63, %v2156_v34 }
 0x485   :  { %1640 = vrot.lane.b32.xlu1 %v1573_v1, %s3117_s4 }
 0x489   :  { %2222 = vrot.lane.b32.xlu1 %v2156_v34, %s3117_s4 }
 0x48d   :  { %1595 = vrot.lane.b32.xlu1 %v1585_v40, %s3120_s8 }
 0x491   :  { %2177 = vrot.lane.b32.xlu1 %v2168_v9, %s3120_s8  ;;  %v2134_v9 = vmul.f32 %v3854_v20, %v3796_v51  ;;  %v3941_v20 = vpop.xlane.xlu0 %2110 }
 0x4b0   :  { %v1530_v62 = vpop.xlane.xlu1 %1529 }
 0x4b1   :  { %1537 = vst.msk [vmem:[#allocation2 + $0x10] sm:$0xff] %vm1534_vm1, %v1530_v62 }
 0x4b4   :  { %v1562_v12 = vpop.permute.xlu1 %1561 }
 0x4b5   :  { %v1570_v52 = vmul.f32 %v3669_v44, %v1562_v12 }
 0x4b7   :  { %v1574_v14 = vadd.f32 %v1570_v52, %v1550_v60  ;;  %v1628_v60 = vmul.f32 %v3490_v8, %v3748_v29 }
 0x4b8   :  { %v2144_v45 = vpop.permute.xlu1 %2143 }
 0x4b9   :  { %v2153_v3 = vmul.f32 %v3690_v25, %v2144_v45  ;;  %1642 = vrot.lane.b32.xlu0 %v1574_v14, %s3117_s4  ;;  %v1586_v1 = vmul.f32 %v3866_v57, %v1574_v14 }
 0x4bb   :  { %v2157_v18 = vadd.f32 %v2153_v3, %v2133_v41  ;;  %1597 = vrot.lane.b32.xlu1 %v1586_v1, %s3120_s8  ;;  %v3943_v3 = vpop.xlane.xlu0 %2116 }
 0x4bd   :  { %2224 = vrot.lane.b32.xlu0 %v2157_v18, %s3117_s4  ;;  %v2169_v16 = vmul.f32 %v3859_v63, %v2157_v18 }
 0x4bf   :  { %v2221_v1 = vpop.permute.xlu0 %2220 }
 0x4c1   :  { %2179 = vrot.lane.b32.xlu0 %v2169_v16, %s3120_s8 }
 0x4c3   :  { %v1594_v18 = vpop.permute.xlu0 %1593 }
 0x4e9   :  { %v1533_v46 = vpop.xlane.xlu1 %1532 }
 0x4ea   :  { %1538 = vst.msk [vmem:[#allocation2 + $0x18] sm:$0xff] %vm1534_vm1, %v1533_v46  ;;  %v1606_v46 = vsel %vm131_vm0, %v1594_v18, 0.0  ;;  %vm2661_vm1 = vcmask 130168  }
 0x4ed   :  { %v3928_v34 = vpop.xlane.xlu1 %2113 }
 0x4f1   :  { %v2146_v40 = vpop.permute.xlu1 %2145 }
 0x4f2   :  { %v2154_v57 = vmul.f32 %v3686_v58, %v2146_v40  ;;  %v2176_v40 = vpop.permute.xlu0 %2175 }
 0x4f4   :  { %v2158_v62 = vadd.f32 %v2154_v57, %v2134_v9  ;;  %v2187_v9 = vsel %vm131_vm0, %v2176_v40, 0.0 }
 0x4f5   :  { %v1637_v12 = vpop.permute.xlu1 %1636 }
 0x4f6   :  { %v1648_v52 = vmul.f32 %v3639_v43, %v1637_v12  ;;  %2226 = vrot.lane.b32.xlu1 %v2158_v62, %s3117_s4  ;;  %v2170_v14 = vmul.f32 %v3859_v63, %v2158_v62  ;;  %v2232_v62 = vmul.f32 %v3707_v4, %v2221_v1 }
 0x4f8   :  { %v1652_v45 = vadd.f32 %v1648_v52, %v1628_v60  ;;  %v2212_v60 = vmul.f32 %v3476_v5, %v3764_v56  ;;  %v1629_v52 = vmul.f32 %v3490_v8, %v3762_v13 }
 0x4f9   :  { %v1592_v16 = vpop.permute.xlu1 %1591 }
 0x4fa   :  { %2181 = vrot.lane.b32.xlu1 %v2170_v14, %s3120_s8  ;;  %v1664_v41 = vmul.f32 %v3868_v6, %v1652_v45  ;;  %v1603_v63 = vsel %vm131_vm0, %v1592_v16, 0.0  ;;  %v2236_v14 = vadd.f32 %v2232_v62, %v2212_v60 }
 0x4fc   :  { %1672 = vrot.lane.b32.xlu0 %v1664_v41, %s3119_s5 }
 0x4fd   :  { %v1639_v57 = vpop.permute.xlu1 %1638 }
 0x4fe   :  { %v1649_v12 = vmul.f32 %v3649_v39, %v1639_v57  ;;  %v2213_v57 = vmul.f32 %v3476_v5, %v3780_v33 }
 0x500   :  { %v1653_v41 = vadd.f32 %v1649_v12, %v1629_v52 }
 0x501   :  { %v1641_v18 = vpop.permute.xlu1 %1640 }
 0x502   :  { %v1665_v16 = vmul.f32 %v3868_v6, %v1653_v41  ;;  %v1650_v1 = vmul.f32 %v3673_v49, %v1641_v18 }
 0x505   :  { %v2223_v40 = vpop.permute.xlu1 %2222 }
 0x509   :  { %v1596_v52 = vpop.permute.xlu1 %1595 }
 0x50d   :  { %v2178_v18 = vpop.permute.xlu1 %2177 }
 0x51b   :  { %1607 = vadd.xlane.f32.xlu0 %v1606_v46  ;;  %v2248_v46 = vmul.f32 %v3482_v7, %v2236_v14 }
 0x51e   :  { %1604 = vadd.xlane.f32.xlu1 %v1603_v63  ;;  %v1630_v63 = vmul.f32 %v3490_v8, %v3778_v31 }
 0x51f   :  { %2188 = vadd.xlane.f32.xlu0 %v2187_v9  ;;  %v2233_v9 = vmul.f32 %v3698_v2, %v2223_v40 }
 0x521   :  { %v2237_v62 = vadd.f32 %v2233_v9, %v2213_v57 }
 0x523   :  { %v2249_v40 = vmul.f32 %v3482_v7, %v2237_v62 }
 0x52b   :  { %v1643_v60 = vpop.permute.xlu0 %1642 }
 0x52d   :  { %v1598_v57 = vpop.permute.xlu1 %1597 }
 0x52f   :  { %1717 = vrot.lane.b32.xlu1 %v1652_v45, %s3117_s4  ;;  %v1654_v45 = vadd.f32 %v1650_v1, %v1630_v63  ;;  %v1651_v63 = vmul.f32 %v3669_v44, %v1643_v60  ;;  %v2214_v60 = vmul.f32 %v3476_v5, %v3789_v55 }
 0x531   :  { %v1666_v12 = vmul.f32 %v3868_v6, %v1654_v45 }
 0x533   :  { %2301 = vrot.lane.b32.xlu1 %v2236_v14, %s3117_s4  ;;  %v2225_v14 = vpop.permute.xlu0 %2224 }
 0x535   :  { %1719 = vrot.lane.b32.xlu0 %v1653_v41, %s3117_s4  ;;  %v1609_v41 = vsel %vm131_vm0, %v1596_v52, 0.0  ;;  %v1612_v52 = vsel %vm131_vm0, %v1598_v57, 0.0 }
 0x537   :  { %1674 = vrot.lane.b32.xlu1 %v1665_v16, %s3119_s5  ;;  %v2190_v16 = vsel %vm131_vm0, %v2178_v18, 0.0  ;;  %v2180_v1 = vpop.permute.xlu0 %2179 }
 0x539   :  { %2256 = vrot.lane.b32.xlu0 %v2248_v46, %s3119_s5  ;;  %v2193_v46 = vsel %vm131_vm0, %v2180_v1, 0.0 }
 0x53d   :  { %1721 = vrot.lane.b32.xlu0 %v1654_v45, %s3117_s4  ;;  %v1631_v45 = vmul.f32 %v3490_v8, %v3787_v19 }
 0x53f   :  { %v1655_v9 = vadd.f32 %v1651_v63, %v1631_v45  ;;  %v2215_v45 = vmul.f32 %v3476_v5, %v3796_v51 }
 0x541   :  { %2303 = vrot.lane.b32.xlu0 %v2237_v62, %s3117_s4  ;;  %v2234_v62 = vmul.f32 %v3690_v25, %v2225_v14 }
 0x543   :  { %v2238_v8 = vadd.f32 %v2234_v62, %v2214_v60 }
 0x545   :  { %1676 = vrot.lane.b32.xlu0 %v1666_v12, %s3119_s5  ;;  %v2250_v14 = vmul.f32 %v3482_v7, %v2238_v8 }
 0x55b   :  { %1610 = vadd.xlane.f32.xlu1 %v1609_v41 }
 0x55f   :  { %2191 = vadd.xlane.f32.xlu1 %v2190_v16 }
 0x564   :  { %2194 = vadd.xlane.f32.xlu0 %v2193_v46  ;;  %v1667_v46 = vmul.f32 %v3868_v6, %v1655_v9 }
 0x568   :  { %v2227_v12 = vpop.permute.xlu1 %2226 }
 0x569   :  { %v2235_v63 = vmul.f32 %v3686_v58, %v2227_v12 }
 0x56b   :  { %v2239_v57 = vadd.f32 %v2235_v63, %v2215_v45 }
 0x56c   :  { %v2182_v41 = vpop.permute.xlu1 %2181 }
 0x56d   :  { %v2196_v18 = vsel %vm131_vm0, %v2182_v41, 0.0 }
 0x56e   :  { %v1673_v16 = vpop.permute.xlu0 %1672 }
 0x56f   :  { %v1684_v5 = vsel %vm131_vm0, %v1673_v16, 0.0  ;;  %v1709_v16 = vmul.f32 %v3492_v10, %v3748_v29  ;;  %v1711_v29 = vmul.f32 %v3492_v10, %v3778_v31  ;;  %v1712_v31 = vmul.f32 %v3492_v10, %v3787_v19 }
 0x570   :  { %2258 = vrot.lane.b32.xlu1 %v2249_v40, %s3119_s5 }
 0x57a   :  { %1723 = vrot.lane.b32.xlu0 %v1655_v9, %s3117_s4 }
 0x594   :  { %1613 = vadd.xlane.f32.xlu1 %v1612_v52  ;;  %v2251_v52 = vmul.f32 %v3482_v7, %v2239_v57  ;;  %v1710_v7 = vmul.f32 %v3492_v10, %v3762_v13 }
 0x599   :  { %2197 = vadd.xlane.f32.xlu0 %v2196_v18 }
 0x5a4   :  { %v1608_v1 = vpop.xlane.xlu0 %1607 }
 0x5a5   :  { %1617 = vst.msk [vmem:[#allocation2 + $0x8] sm:$0xff] %vm1615_vm4, %v1608_v1  ;;  %2305 = vrot.lane.b32.xlu1 %v2238_v8, %s3117_s4 }
 0x5a7   :  { %v1605_v40 = vpop.xlane.xlu1 %1604 }
 0x5a8   :  { %1616 = vst.msk [vmem:[#allocation2] sm:$0xff] %vm1615_vm4, %v1605_v40  ;;  %v3998_v41 = vpop.xlane.xlu0 %2188 }
 0x5a9   :  { %1678 = vrot.lane.b32.xlu1 %v1667_v46, %s3119_s5 }
 0x5ab   :  { %v1718_v6 = vpop.permute.xlu1 %1717 }
 0x5ac   :  { %v1720_v62 = vpop.permute.xlu0 %1719  ;;  %v1729_v63 = vmul.f32 %v3639_v43, %v1718_v6 }
 0x5ad   :  { %2260 = vrot.lane.b32.xlu1 %v2250_v14, %s3119_s5  ;;  %v1730_v8 = vmul.f32 %v3649_v39, %v1720_v62  ;;  %v2293_v14 = vmul.f32 %v3478_v0, %v3764_v56 }
 0x5ae   :  { %v1733_v13 = vadd.f32 %v1729_v63, %v1709_v16 }
 0x5af   :  { %2307 = vrot.lane.b32.xlu0 %v2239_v57, %s3117_s4  ;;  %v2302_v9 = vpop.permute.xlu1 %2301  ;;  %v1734_v46 = vadd.f32 %v1730_v8, %v1710_v7 }
 0x5b0   :  { %v2257_v60 = vpop.permute.xlu0 %2256  ;;  %v2313_v40 = vmul.f32 %v3707_v4, %v2302_v9  ;;  %v2294_v9 = vmul.f32 %v3478_v0, %v3780_v33 }
 0x5b1   :  { %v1746_v39 = vmul.f32 %v3871_v30, %v1734_v46  ;;  %v2268_v7 = vsel %vm131_vm0, %v2257_v60, 0.0 }
 0x5b2   :  { %v2317_v57 = vadd.f32 %v2313_v40, %v2293_v14 }
 0x5b3   :  { %2262 = vrot.lane.b32.xlu0 %v2251_v52, %s3119_s5  ;;  %v1675_v12 = vpop.permute.xlu1 %1674 }
 0x5b4   :  { %v1687_v18 = vsel %vm131_vm0, %v1675_v12, 0.0  ;;  %v1722_v1 = vpop.permute.xlu0 %1721  ;;  %v2329_v43 = vmul.f32 %v3862_v17, %v2317_v57  ;;  %v1745_v12 = vmul.f32 %v3871_v30, %v1733_v13 }
 0x5b5   :  { %v1731_v4 = vmul.f32 %v3673_v49, %v1722_v1 }
 0x5b8   :  { %v2304_v45 = vpop.permute.xlu0 %2303 }
 0x5b9   :  { %v2314_v56 = vmul.f32 %v3698_v2, %v2304_v45 }
 0x5bb   :  { %v2318_v62 = vadd.f32 %v2314_v56, %v2294_v9 }
 0x5bc   :  { %v1677_v6 = vpop.permute.xlu0 %1676 }
 0x5bd   :  { %v2330_v2 = vmul.f32 %v3862_v17, %v2318_v62  ;;  %v1690_v60 = vsel %vm131_vm0, %v1677_v6, 0.0 }
 0x5d1   :  { %1688 = vadd.xlane.f32.xlu1 %v1687_v18  ;;  %v1735_v18 = vadd.f32 %v1731_v4, %v1711_v29  ;;  %v4472_v29 = vld [vmem:[#allocation29_spill] sm:$0xff] }
 0x5d2   :  { %1685 = vadd.xlane.f32.xlu0 %v1684_v5 }
 0x5e2   :  { %1796 = vrot.lane.b32.xlu1 %v1734_v46, %s3117_s4 }
 0x5e4   :  { %v1611_v52 = vpop.xlane.xlu1 %1610 }
 0x5e5   :  { %1618 = vst.msk [vmem:[#allocation2 + $0x10] sm:$0xff] %vm1615_vm4, %v1611_v52 }
 0x5e6   :  { %1755 = vrot.lane.b32.xlu1 %v1746_v39, %s3117_s4 }
 0x5e8   :  { %1794 = vrot.lane.b32.xlu0 %v1733_v13, %s3117_s4  ;;  %v4038_v46 = vpop.xlane.xlu1 %2191 }
 0x5ea   :  { %2337 = vrot.lane.b32.xlu1 %v2329_v43, %s3117_s4 }
 0x5ec   :  { %1753 = vrot.lane.b32.xlu0 %v1745_v12, %s3117_s4  ;;  %v4040_v40 = vpop.permute.xlu1 %2258 }
 0x5ed   :  { %v4026_v49 = vpop.xlane.xlu0 %2194 }
 0x5ee   :  { %1798 = vrot.lane.b32.xlu1 %v1735_v18, %s3117_s4 }
 0x5f1   :  { %v1724_v5 = vpop.permute.xlu0 %1723 }
 0x5f2   :  { %v1732_v33 = vmul.f32 %v3669_v44, %v1724_v5  ;;  %2339 = vrot.lane.b32.xlu1 %v2330_v2, %s3117_s4  ;;  %v2295_v44 = vmul.f32 %v3478_v0, %v3789_v55 }
 0x5f4   :  { %v1736_v8 = vadd.f32 %v1732_v33, %v1712_v31 }
 0x5f6   :  { %1800 = vrot.lane.b32.xlu1 %v1736_v8, %s3117_s4  ;;  %v1748_v1 = vmul.f32 %v3871_v30, %v1736_v8 }
 0x5fa   :  { %1759 = vrot.lane.b32.xlu1 %v1748_v1, %s3117_s4 }
 0x60b   :  { %2269 = vadd.xlane.f32.xlu0 %v2268_v7 }
 0x61d   :  { %v1614_v63 = vpop.xlane.xlu1 %1613 }
 0x61e   :  { %1619 = vst.msk [vmem:[#allocation2 + $0x18] sm:$0xff] %vm1615_vm4, %v1614_v63 }
 0x621   :  { %2378 = vrot.lane.b32.xlu0 %v2317_v57, %s3117_s4  ;;  %v2306_v10 = vpop.permute.xlu1 %2305 }
 0x622   :  { %v2315_v19 = vmul.f32 %v3690_v25, %v2306_v10  ;;  %v4050_v16 = vpop.xlane.xlu0 %2197  ;;  %v1747_v25 = vmul.f32 %v3871_v30, %v1735_v18  ;;  %v4474_v18 = vld [vmem:[#allocation37_spill] sm:$0xff]  ;;  %v4475_v10 = vld [vmem:[#allocation31_spill] sm:$0xff] }
 0x624   :  { %v2319_v14 = vadd.f32 %v2315_v19, %v2295_v44 }
 0x625   :  { %v1679_v39 = vpop.permute.xlu1 %1678 }
 0x626   :  { %v2331_v45 = vmul.f32 %v3862_v17, %v2319_v14  ;;  %v2308_v52 = vpop.permute.xlu0 %2307 }
 0x628   :  { %2341 = vrot.lane.b32.xlu1 %v2331_v45, %s3117_s4 }
 0x629   :  { %v4052_v13 = vpop.permute.xlu1 %2260 }
 0x62a   :  { %v4055_v57 = vpop.permute.xlu0 %2262 }
 0x640   :  { %1691 = vadd.xlane.f32.xlu0 %v1690_v60  ;;  %v4476_v60 = vld [vmem:[#allocation32_spill] sm:$0xff] }
 0x656   :  { %2380 = vrot.lane.b32.xlu0 %v2318_v62, %s3117_s4  ;;  %v4473_v62 = vld [vmem:[#allocation21_spill] sm:$0xff] }
 0x657   :  { %v1817_v30 = vrot.slane %v4473_v62, %v3318_v48 }
 0x65a   :  { %1757 = vrot.lane.b32.xlu0 %v1747_v25, %s3117_s4  ;;  %v1689_v55 = vpop.xlane.xlu1 %1688 }
 0x65b   :  { %1698 = vst.msk [vmem:[#allocation2 + $0x8] sm:$0xff] %vm1696_vm7, %v1689_v55  ;;  %v1686_v43 = vpop.xlane.xlu0 %1685 }
 0x65c   :  { %1697 = vst.msk [vmem:[#allocation2] sm:$0xff] %vm1696_vm7, %v1686_v43 }
 0x65e   :  { %v1797_v4 = vpop.permute.xlu1 %1796 }
 0x65f   :  { %v1807_v56 = vmul.f32 %v3655_v26, %v1797_v4  ;;  %v1795_v6 = vpop.permute.xlu0 %1794  ;;  %v1693_v4 = vsel %vm131_vm0, %v1679_v39, 0.0 }
 0x660   :  { %v1806_v9 = vmul.f32 %v4472_v29, %v1795_v6  ;;  %v2296_v6 = vmul.f32 %v3478_v0, %v3796_v51  ;;  %v4478_v0 = vld [vmem:[#allocation20_spill] sm:$0xff] }
 0x661   :  { %v1811_v12 = vadd.f32 %v1807_v56, %v3826_v21  ;;  %v2316_v56 = vmul.f32 %v3686_v58, %v2308_v52 }
 0x662   :  { %v1810_v2 = vadd.f32 %v1806_v9, %v4474_v18  ;;  %v1756_v5 = vpop.permute.xlu1 %1755  ;;  %v4479_v18 = vld [vmem:[#allocation30_spill] sm:$0xff] }
 0x663   :  { %v1768_v31 = vsel %vm131_vm0, %v1756_v5, 0.0  ;;  %v1819_v33 = vmul.f32 %v1817_v30, %v1811_v12  ;;  %v2320_v9 = vadd.f32 %v2316_v56, %v2296_v6  ;;  %v4480_v6 = vld [vmem:[#allocation33_spill] sm:$0xff] }
 0x664   :  { %1769 = vadd.xlane.f32.xlu1 %v1768_v31  ;;  %v1818_v8 = vmul.f32 %v1817_v30, %v1810_v2 }
 0x666   :  { %v4068_v1 = vpop.permute.xlu1 %2337  ;;  %v1822_v7 = vsel %vm131_vm0, %v1818_v8, 0.0 }
 0x668   :  { %1823 = vadd.xlane.f32.xlu1 %v1822_v7 }
 0x66a   :  { %v1799_v63 = vpop.permute.xlu1 %1798 }
 0x66b   :  { %v1808_v44 = vmul.f32 %v4475_v10, %v1799_v63 }
 0x66d   :  { %v1812_v21 = vadd.f32 %v1808_v44, %v3830_v36  ;;  %v1754_v36 = vpop.permute.xlu0 %1753 }
 0x66e   :  { %v4073_v19 = vpop.permute.xlu1 %2339 }
 0x66f   :  { %v1820_v48 = vmul.f32 %v1817_v30, %v1812_v21 }
 0x672   :  { %v1801_v45 = vpop.permute.xlu1 %1800 }
 0x673   :  { %v1809_v25 = vmul.f32 %v4476_v60, %v1801_v45  ;;  %v1828_v45 = vsel %vm131_vm0, %v1820_v48, 0.0 }
 0x675   :  { %v1813_v55 = vadd.f32 %v1809_v25, %v3834_v22  ;;  %v2332_v22 = vmul.f32 %v3862_v17, %v2320_v9 }
 0x676   :  { %v1760_v8 = vpop.permute.xlu1 %1759 }
 0x677   :  { %v1821_v43 = vmul.f32 %v1817_v30, %v1813_v55  ;;  %v4477_v30 = vld [vmem:[#allocation35_spill] sm:$0xff] }
 0x679   :  { %1694 = vadd.xlane.f32.xlu0 %v1693_v4  ;;  %1857 = vrot.lane.b32.xlu1 %v1811_v12, %s3117_s4  ;;  %v1831_v25 = vsel %vm131_vm0, %v1821_v43, 0.0 }
 0x68f   :  { %2382 = vrot.lane.b32.xlu0 %v2319_v14, %s3117_s4  ;;  %v1765_v14 = vsel %vm131_vm0, %v1754_v36, 0.0 }
 0x693   :  { %2384 = vrot.lane.b32.xlu0 %v2320_v9, %s3117_s4 }
 0x694   :  { %v4084_v62 = vpop.xlane.xlu0 %2269 }
 0x697   :  { %2343 = vrot.lane.b32.xlu0 %v2332_v22, %s3117_s4  ;;  %v4481_v22 = vld [vmem:[#allocation34_spill] sm:$0xff] }
 0x698   :  { %v2379_v39 = vpop.permute.xlu0 %2378 }
 0x699   :  { %v2390_v12 = vmul.f32 %v4477_v30, %v2379_v39 }
 0x69a   :  { %v4105_v63 = vpop.permute.xlu1 %2341 }
 0x69b   :  { %v2394_v58 = vadd.f32 %v2390_v12, %v3837_v54 }
 0x69d   :  { %2439 = vrot.lane.b32.xlu1 %v2394_v58, %s3117_s4  ;;  %v4092_v51 = vmul.f32 %v4478_v0, %v2394_v58 }
 0x6a1   :  { %1859 = vrot.lane.b32.xlu1 %v1812_v21, %s3117_s4  ;;  %v1774_v21 = vsel %vm131_vm0, %v1760_v8, 0.0 }
 0x6b6   :  { %1766 = vadd.xlane.f32.xlu0 %v1765_v14 }
 0x6c9   :  { %v1692_v52 = vpop.xlane.xlu0 %1691 }
 0x6ca   :  { %1699 = vst.msk [vmem:[#allocation2 + $0x10] sm:$0xff] %vm1696_vm7, %v1692_v52 }
 0x6cc   :  { %1855 = vrot.lane.b32.xlu0 %v1810_v2, %s3117_s4 }
 0x6cd   :  { %v2381_v17 = vpop.permute.xlu0 %2380 }
 0x6ce   :  { %v2391_v5 = vmul.f32 %v4479_v18, %v2381_v17 }
 0x6d0   :  { %v2395_v54 = vadd.f32 %v2391_v5, %v3840_v38  ;;  %v1825_v38 = vsel %vm131_vm0, %v1819_v33, 0.0 }
 0x6d1   :  { %v1758_v7 = vpop.permute.xlu0 %1757 }
 0x6d2   :  { %2441 = vrot.lane.b32.xlu1 %v2395_v54, %s3117_s4  ;;  %v4102_v31 = vmul.f32 %v4478_v0, %v2395_v54  ;;  %v1771_v44 = vsel %vm131_vm0, %v1758_v7, 0.0  ;;  %v4482_v54 = vld [vmem:[#allocation22_spill] sm:$0xff] }
 0x6d3   :  { %v2431_v8 = vmul.f32 %v4482_v54, %v3810_v50 }
 0x6d6   :  { %1861 = vrot.lane.b32.xlu1 %v1813_v55, %s3117_s4 }
 0x6eb   :  { %1772 = vadd.xlane.f32.xlu0 %v1771_v44 }
 0x6ed   :  { %v1770_v2 = vpop.xlane.xlu1 %1769 }
 0x6ee   :  { %1779 = vst.msk [vmem:[#allocation2 + $0x8] sm:$0xff] %vm1777_vm8, %v1770_v2 }
 0x6ef   :  { %1826 = vadd.xlane.f32.xlu0 %v1825_v38 }
 0x6f1   :  { %v1824_v4 = vpop.xlane.xlu1 %1823 }
 0x6f3   :  { %1775 = vadd.xlane.f32.xlu0 %v1774_v21 }
 0x6f5   :  { %v1858_v12 = vpop.permute.xlu1 %1857 }
 0x6f6   :  { %v1868_v58 = vmul.f32 %v3655_v26, %v1858_v12 }
 0x6f7   :  { %1829 = vadd.xlane.f32.xlu0 %v1828_v45 }
 0x6fb   :  { %1832 = vadd.xlane.f32.xlu0 %v1831_v25 }
 0x702   :  { %v1695_v55 = vpop.xlane.xlu0 %1694 }
 0x703   :  { %1700 = vst.msk [vmem:[#allocation2 + $0x18] sm:$0xff] %vm1696_vm7, %v1695_v55  ;;  %v4485_v55 = vld [vmem:[#allocation36_spill] sm:$0xff] }
 0x706   :  { %v2383_v56 = vpop.permute.xlu0 %2382 }
 0x707   :  { %v2392_v36 = vmul.f32 %v4480_v6, %v2383_v56  ;;  %v1847_v56 = vmul.f32 %v3874_v24, %v4485_v55 }
 0x709   :  { %v2396_v9 = vadd.f32 %v2392_v36, %v3843_v35  ;;  %v1848_v35 = vmul.f32 %v3874_v24, %v3801_v61 }
 0x70a   :  { %v2385_v33 = vpop.permute.xlu0 %2384 }
 0x70b   :  { %v2393_v39 = vmul.f32 %v4481_v22, %v2385_v33  ;;  %2443 = vrot.lane.b32.xlu1 %v2396_v9, %s3117_s4  ;;  %v4119_v48 = vmul.f32 %v4478_v0, %v2396_v9  ;;  %v1872_v17 = vadd.f32 %v1868_v58, %v1848_v35  ;;  %v2432_v33 = vmul.f32 %v4482_v54, %v3813_v11 }
 0x70d   :  { %v2397_v43 = vadd.f32 %v2393_v39, %v3846_v32  ;;  %v4483_v32 = vld [vmem:[#allocation26_spill] sm:$0xff] }
 0x70e   :  { %v1884_v7 = vmul.f32 %v4483_v32, %v1872_v17  ;;  %v4137_v38 = vpop.permute.xlu0 %2343 }
 0x70f   :  { %v4124_v14 = vmul.f32 %v4478_v0, %v2397_v43  ;;  %v2440_v52 = vpop.permute.xlu1 %2439  ;;  %v4484_v0 = vld [vmem:[#allocation23_spill] sm:$0xff] }
 0x710   :  { %v2451_v5 = vmul.f32 %v4477_v30, %v2440_v52 }
 0x711   :  { %2445 = vrot.lane.b32.xlu0 %v2397_v43, %s3117_s4 }
 0x712   :  { %v2455_v44 = vadd.f32 %v2451_v5, %v2431_v8 }
 0x713   :  { %v1860_v45 = vpop.permute.xlu1 %1859 }
 0x714   :  { %v2467_v2 = vmul.f32 %v4484_v0, %v2455_v44  ;;  %v1869_v8 = vmul.f32 %v4475_v10, %v1860_v45 }
 0x715   :  { %1938 = vrot.lane.b32.xlu0 %v1872_v17, %s3117_s4  ;;  %v1850_v17 = vmul.f32 %v3874_v24, %v3807_v23 }
 0x719   :  { %1893 = vrot.lane.b32.xlu0 %v1884_v7, %s3120_s8  ;;  %v1849_v7 = vmul.f32 %v3874_v24, %v3804_v47 }
 0x71d   :  { %2475 = vrot.lane.b32.xlu0 %v2467_v2, %s3120_s8  ;;  %v1873_v2 = vadd.f32 %v1869_v8, %v1849_v7 }
 0x73f   :  { %v1767_v21 = vpop.xlane.xlu0 %1766 }
 0x740   :  { %1778 = vst.msk [vmem:[#allocation2] sm:$0xff] %vm1777_vm8, %v1767_v21  ;;  %v1885_v21 = vmul.f32 %v4483_v32, %v1873_v2 }
 0x741   :  { %1835 = vst.msk [vmem:[#allocation2] sm:$0xff] %vm1834_vm5, %v1824_v4 }
 0x743   :  { %v1856_v25 = vpop.permute.xlu0 %1855 }
 0x744   :  { %v1867_v36 = vmul.f32 %v4472_v29, %v1856_v25  ;;  %v2442_v9 = vpop.permute.xlu1 %2441 }
 0x745   :  { %v2452_v39 = vmul.f32 %v4479_v18, %v2442_v9 }
 0x746   :  { %v1871_v12 = vadd.f32 %v1867_v36, %v1847_v56 }
 0x747   :  { %v2456_v43 = vadd.f32 %v2452_v39, %v2432_v33 }
 0x748   :  { %1936 = vrot.lane.b32.xlu1 %v1871_v12, %s3117_s4  ;;  %v1862_v58 = vpop.permute.xlu1 %1861  ;;  %v1883_v35 = vmul.f32 %v4483_v32, %v1871_v12 }
 0x749   :  { %v2468_v52 = vmul.f32 %v4484_v0, %v2456_v43  ;;  %v1870_v4 = vmul.f32 %v4476_v60, %v1862_v58 }
 0x74b   :  { %2477 = vrot.lane.b32.xlu0 %v2468_v52, %s3120_s8  ;;  %v1874_v5 = vadd.f32 %v1870_v4, %v1850_v17  ;;  %v2434_v52 = vmul.f32 %v4482_v54, %v3820_v37 }
 0x74c   :  { %1891 = vrot.lane.b32.xlu1 %v1883_v35, %s3120_s8 }
 0x74d   :  { %v1886_v12 = vmul.f32 %v4483_v32, %v1874_v5 }
 0x74f   :  { %1942 = vrot.lane.b32.xlu0 %v1874_v5, %s3117_s4  ;;  %v1928_v5 = vmul.f32 %v3876_v42, %v4485_v55 }
 0x750   :  { %2520 = vrot.lane.b32.xlu1 %v2455_v44, %s3117_s4  ;;  %v2433_v44 = vmul.f32 %v4482_v54, %v3817_v59 }
 0x754   :  { %1940 = vrot.lane.b32.xlu1 %v1873_v2, %s3117_s4 }
 0x758   :  { %2522 = vrot.lane.b32.xlu1 %v2456_v43, %s3117_s4 }
 0x75c   :  { %1895 = vrot.lane.b32.xlu1 %v1885_v21, %s3120_s8 }
 0x774   :  { %v1773_v25 = vpop.xlane.xlu0 %1772 }
 0x775   :  { %1780 = vst.msk [vmem:[#allocation2 + $0x10] sm:$0xff] %vm1777_vm8, %v1773_v25 }
 0x778   :  { %v1827_v45 = vpop.xlane.xlu0 %1826 }
 0x779   :  { %1836 = vst.msk [vmem:[#allocation2 + $0x8] sm:$0xff] %vm1834_vm5, %v1827_v45 }
 0x77c   :  { %v1776_v56 = vpop.xlane.xlu0 %1775 }
 0x77d   :  { %1781 = vst.msk [vmem:[#allocation2 + $0x18] sm:$0xff] %vm1777_vm8, %v1776_v56  ;;  %v2444_v24 = vpop.permute.xlu1 %2443  ;;  %v1929_v56 = vmul.f32 %v3876_v42, %v3801_v61 }
 0x77e   :  { %v2453_v36 = vmul.f32 %v4480_v6, %v2444_v24 }
 0x780   :  { %v2457_v9 = vadd.f32 %v2453_v36, %v2433_v44  ;;  %v1830_v33 = vpop.xlane.xlu0 %1829  ;;  %v2512_v36 = vmul.f32 %v3856_v28, %v3810_v50 }
 0x781   :  { %1837 = vst.msk [vmem:[#allocation2 + $0x10] sm:$0xff] %vm1834_vm5, %v1830_v33 }
 0x782   :  { %v2469_v39 = vmul.f32 %v4484_v0, %v2457_v9  ;;  %2524 = vrot.lane.b32.xlu0 %v2457_v9, %s3117_s4 }
 0x784   :  { %v1833_v43 = vpop.xlane.xlu0 %1832  ;;  %2479 = vrot.lane.b32.xlu1 %v2469_v39, %s3120_s8 }
 0x785   :  { %1838 = vst.msk [vmem:[#allocation2 + $0x18] sm:$0xff] %vm1834_vm5, %v1833_v43 }
 0x786   :  { %1897 = vrot.lane.b32.xlu0 %v1886_v12, %s3120_s8 }
 0x788   :  { %v2446_v58 = vpop.permute.xlu0 %2445 }
 0x789   :  { %v2454_v4 = vmul.f32 %v4481_v22, %v2446_v58 }
 0x78b   :  { %v2458_v35 = vadd.f32 %v2454_v4, %v2434_v52  ;;  %v4486_v52 = vld [vmem:[#allocation24_spill] sm:$0xff] }
 0x78d   :  { %v2470_v17 = vmul.f32 %v4484_v0, %v2458_v35  ;;  %2526 = vrot.lane.b32.xlu1 %v2458_v35, %s3117_s4  ;;  %v1939_v0 = vpop.permute.xlu0 %1938 }
 0x78e   :  { %v1949_v25 = vmul.f32 %v3655_v26, %v1939_v0 }
 0x78f   :  { %2481 = vrot.lane.b32.xlu0 %v2470_v17, %s3120_s8 }
 0x790   :  { %v1953_v24 = vadd.f32 %v1949_v25, %v1929_v56 }
 0x791   :  { %v1894_v39 = vpop.permute.xlu0 %1893 }
 0x792   :  { %v1965_v33 = vmul.f32 %v3878_v53, %v1953_v24  ;;  %v1906_v12 = vsel %vm131_vm0, %v1894_v39, 0.0 }
 0x7ba   :  { %v1937_v32 = vpop.permute.xlu1 %1936 }
 0x7bb   :  { %v1948_v8 = vmul.f32 %v4472_v29, %v1937_v32  ;;  %v1930_v32 = vmul.f32 %v3876_v42, %v3804_v47 }
 0x7bd   :  { %v1952_v7 = vadd.f32 %v1948_v8, %v1928_v5 }
 0x7be   :  { %v1892_v2 = vpop.permute.xlu1 %1891 }
 0x7bf   :  { %v1903_v21 = vsel %vm131_vm0, %v1892_v2, 0.0  ;;  %2017 = vrot.lane.b32.xlu0 %v1952_v7, %s3117_s4  ;;  %v1964_v54 = vmul.f32 %v3878_v53, %v1952_v7 }
 0x7c0   :  { %1904 = vadd.xlane.f32.xlu1 %v1903_v21 }
 0x7c2   :  { %v2521_v45 = vpop.permute.xlu1 %2520 }
 0x7c3   :  { %1972 = vrot.lane.b32.xlu0 %v1964_v54, %s3119_s5  ;;  %v2532_v44 = vmul.f32 %v4477_v30, %v2521_v45  ;;  %v2515_v54 = vmul.f32 %v3856_v28, %v3820_v37 }
 0x7c5   :  { %v2536_v9 = vadd.f32 %v2532_v44, %v2512_v36 }
 0x7c6   :  { %v1941_v43 = vpop.permute.xlu1 %1940 }
 0x7c7   :  { %v2548_v4 = vmul.f32 %v4486_v52, %v2536_v9  ;;  %v1950_v35 = vmul.f32 %v4475_v10, %v1941_v43 }
 0x7c9   :  { %v1954_v5 = vadd.f32 %v1950_v35, %v1930_v32 }
 0x7ca   :  { %v2523_v58 = vpop.permute.xlu1 %2522 }
 0x7cb   :  { %v1966_v2 = vmul.f32 %v3878_v53, %v1954_v5  ;;  %v2533_v56 = vmul.f32 %v4479_v18, %v2523_v58 }
 0x7ce   :  { %v1896_v17 = vpop.permute.xlu1 %1895 }
 0x7cf   :  { %v1909_v7 = vsel %vm131_vm0, %v1896_v17, 0.0 }
 0x7d1   :  { %2019 = vrot.lane.b32.xlu1 %v1953_v24, %s3117_s4  ;;  %v2513_v24 = vmul.f32 %v3856_v28, %v3813_v11 }
 0x7d3   :  { %v2537_v44 = vadd.f32 %v2533_v56, %v2513_v24 }
 0x7d5   :  { %2601 = vrot.lane.b32.xlu1 %v2536_v9, %s3117_s4  ;;  %v2549_v36 = vmul.f32 %v4486_v52, %v2537_v44  ;;  %v4223_v9 = vpop.permute.xlu0 %2475 }
 0x7d9   :  { %1974 = vrot.lane.b32.xlu1 %v1965_v33, %s3119_s5  ;;  %v4225_v33 = vpop.permute.xlu0 %2477 }
 0x7dd   :  { %v1943_v39 = vpop.permute.xlu0 %1942 }
 0x7e2   :  { %1907 = vadd.xlane.f32.xlu0 %v1906_v12 }
 0x7f4   :  { %v2525_v12 = vpop.permute.xlu0 %2524 }
 0x7f6   :  { %v4206_v8 = vpop.permute.xlu1 %2479 }
 0x7f8   :  { %2556 = vrot.lane.b32.xlu0 %v2548_v4, %s3119_s5  ;;  %v1898_v43 = vpop.permute.xlu0 %1897 }
 0x7f9   :  { %v1912_v35 = vsel %vm131_vm0, %v1898_v43, 0.0  ;;  %v4488_v43 = vld [vmem:[#allocation28_spill] sm:$0xff] }
 0x7fc   :  { %2021 = vrot.lane.b32.xlu0 %v1954_v5, %s3117_s4  ;;  %v1951_v5 = vmul.f32 %v4476_v60, %v1943_v39 }
 0x7fd   :  { %1910 = vadd.xlane.f32.xlu1 %v1909_v7  ;;  %v1931_v7 = vmul.f32 %v3876_v42, %v3807_v23  ;;  %v4487_v42 = vld [vmem:[#allocation27_spill] sm:$0xff] }
 0x7ff   :  { %v2527_v21 = vpop.permute.xlu1 %2526 }
 0x800   :  { %v2535_v0 = vmul.f32 %v4481_v22, %v2527_v21  ;;  %1976 = vrot.lane.b32.xlu0 %v1966_v2, %s3119_s5  ;;  %v1955_v2 = vadd.f32 %v1951_v5, %v1931_v7  ;;  %v2534_v21 = vmul.f32 %v4480_v6, %v2525_v12 }
 0x801   :  { %v4227_v4 = vpop.permute.xlu0 %2481 }
 0x802   :  { %v2539_v25 = vadd.f32 %v2535_v0, %v2515_v54  ;;  %v2514_v54 = vmul.f32 %v3856_v28, %v3817_v59  ;;  %v1967_v56 = vmul.f32 %v3878_v53, %v1955_v2 }
 0x804   :  { %v2551_v45 = vmul.f32 %v4486_v52, %v2539_v25  ;;  %v2538_v0 = vadd.f32 %v2534_v21, %v2514_v54  ;;  %v2593_v21 = vmul.f32 %v3864_v15, %v3810_v50 }
 0x806   :  { %2562 = vrot.lane.b32.xlu0 %v2551_v45, %s3119_s5  ;;  %v2550_v39 = vmul.f32 %v4486_v52, %v2538_v0 }
 0x80e   :  { %2603 = vrot.lane.b32.xlu1 %v2537_v44, %s3117_s4  ;;  %v2010_v44 = vmul.f32 %v4487_v42, %v3801_v61 }
 0x812   :  { %2558 = vrot.lane.b32.xlu1 %v2549_v36, %s3119_s5 }
 0x831   :  { %v2018_v58 = vpop.permute.xlu0 %2017 }
 0x832   :  { %v2029_v12 = vmul.f32 %v4472_v29, %v2018_v58 }
 0x835   :  { %v1973_v17 = vpop.permute.xlu0 %1972 }
 0x836   :  { %v1984_v32 = vsel %vm131_vm0, %v1973_v17, 0.0  ;;  %1913 = vadd.xlane.f32.xlu1 %v1912_v35  ;;  %v2009_v17 = vmul.f32 %v4487_v42, %v4485_v55 }
 0x837   :  { %1985 = vadd.xlane.f32.xlu0 %v1984_v32 }
 0x838   :  { %v2033_v53 = vadd.f32 %v2029_v12, %v2009_v17 }
 0x847   :  { %2023 = vrot.lane.b32.xlu1 %v1955_v2, %s3117_s4 }
 0x849   :  { %v1905_v45 = vpop.xlane.xlu1 %1904 }
 0x84a   :  { %1916 = vst.msk [vmem:[#allocation2] sm:$0xff] %vm1915_vm10, %v1905_v45 }
 0x84b   :  { %2605 = vrot.lane.b32.xlu1 %v2538_v0, %s3117_s4 }
 0x84d   :  { %v2020_v24 = vpop.permute.xlu1 %2019 }
 0x84e   :  { %v2030_v36 = vmul.f32 %v3655_v26, %v2020_v24  ;;  %v2045_v26 = vmul.f32 %v4488_v43, %v2033_v53  ;;  %v2595_v53 = vmul.f32 %v3864_v15, %v3817_v59 }
 0x84f   :  { %1978 = vrot.lane.b32.xlu1 %v1967_v56, %s3119_s5  ;;  %v2594_v56 = vmul.f32 %v3864_v15, %v3813_v11 }
 0x850   :  { %v2034_v28 = vadd.f32 %v2030_v36, %v2010_v44  ;;  %v2011_v44 = vmul.f32 %v4487_v42, %v3804_v47 }
 0x851   :  { %v2602_v58 = vpop.permute.xlu1 %2601 }
 0x852   :  { %v2046_v35 = vmul.f32 %v4488_v43, %v2034_v28 }
 0x853   :  { %2560 = vrot.lane.b32.xlu1 %v2550_v39, %s3119_s5 }
 0x854   :  { %2055 = vrot.lane.b32.xlu0 %v2046_v35, %s3117_s4 }
 0x855   :  { %v1975_v5 = vpop.permute.xlu1 %1974 }
 0x856   :  { %v1987_v7 = vsel %vm131_vm0, %v1975_v5, 0.0 }
 0x857   :  { %2607 = vrot.lane.b32.xlu1 %v2539_v25, %s3117_s4  ;;  %v2613_v25 = vmul.f32 %v4477_v30, %v2602_v58  ;;  %v4489_v30 = vld [vmem:[#allocation25_spill] sm:$0xff] }
 0x859   :  { %v2617_v54 = vadd.f32 %v2613_v25, %v2593_v21  ;;  %v2012_v21 = vmul.f32 %v4487_v42, %v3807_v23  ;;  %v2406_v42 = vsel %vm131_vm0, %v4092_v51, 0.0  ;;  %v2412_v51 = vsel %vm131_vm0, %v4119_v48, 0.0 }
 0x85a   :  { %v2277_v48 = vsel %vm131_vm0, %v4055_v57, 0.0  ;;  %v2415_v57 = vsel %vm131_vm0, %v4124_v14, 0.0 }
 0x85b   :  { %2053 = vrot.lane.b32.xlu1 %v2045_v26, %s3117_s4  ;;  %v2629_v28 = vmul.f32 %v4489_v30, %v2617_v54 }
 0x86b   :  { %v1908_v61 = vpop.xlane.xlu0 %1907 }
 0x86c   :  { %1917 = vst.msk [vmem:[#allocation2 + $0x8] sm:$0xff] %vm1915_vm10, %v1908_v61 }
 0x86f   :  { %v4256_v29 = vpop.permute.xlu0 %2556 }
 0x873   :  { %v2022_v52 = vpop.permute.xlu0 %2021 }
 0x874   :  { %v2031_v0 = vmul.f32 %v4475_v10, %v2022_v52 }
 0x876   :  { %v2035_v39 = vadd.f32 %v2031_v0, %v2011_v44 }
 0x877   :  { %v1977_v32 = vpop.permute.xlu0 %1976 }
 0x878   :  { %v1990_v55 = vsel %vm131_vm0, %v1977_v32, 0.0  ;;  %v2047_v50 = vmul.f32 %v4488_v43, %v2035_v39 }
 0x879   :  { %1991 = vadd.xlane.f32.xlu0 %v1990_v55 }
 0x87b   :  { %v4278_v10 = vpop.permute.xlu0 %2562 }
 0x87f   :  { %1988 = vadd.xlane.f32.xlu1 %v1987_v7  ;;  %v2596_v7 = vmul.f32 %v3864_v15, %v3820_v37  ;;  %v2349_v37 = vsel %vm131_vm0, %v4068_v1, 0.0  ;;  %v2409_v1 = vsel %vm131_vm0, %v4102_v31, 0.0  ;;  %v2358_v31 = vsel %vm131_vm0, %v4137_v38, 0.0 }
 0x886   :  { %v1911_v2 = vpop.xlane.xlu1 %1910 }
 0x887   :  { %1918 = vst.msk [vmem:[#allocation2 + $0x10] sm:$0xff] %vm1915_vm10, %v1911_v2 }
 0x88a   :  { %v2604_v45 = vpop.permute.xlu1 %2603 }
 0x88b   :  { %v2614_v24 = vmul.f32 %v4479_v18, %v2604_v45 }
 0x88d   :  { %v2618_v36 = vadd.f32 %v2614_v24, %v2594_v56  ;;  %v2274_v56 = vsel %vm131_vm0, %v4052_v13, 0.0 }
 0x88e   :  { %v4276_v11 = vpop.permute.xlu1 %2558 }
 0x88f   :  { %v2630_v12 = vmul.f32 %v4489_v30, %v2618_v36  ;;  %v2571_v38 = vsel %vm131_vm0, %v4276_v11, 0.0 }
 0x890   :  { %2637 = vrot.lane.b32.xlu1 %v2629_v28, %s3117_s4 }
 0x891   :  { %2639 = vrot.lane.b32.xlu0 %v2630_v12, %s3117_s4 }
 0x894   :  { %2057 = vrot.lane.b32.xlu1 %v2047_v50, %s3117_s4 }
 0x8bf   :  { %v1914_v47 = vpop.xlane.xlu1 %1913 }
 0x8c0   :  { %1919 = vst.msk [vmem:[#allocation2 + $0x18] sm:$0xff] %vm1915_vm10, %v1914_v47  ;;  %v1986_v18 = vpop.xlane.xlu0 %1985 }
 0x8c1   :  { %1997 = vst.msk [vmem:[#allocation2] sm:$0xff] %vm1996_vm11, %v1986_v18 }
 0x8c3   :  { %v2024_v35 = vpop.permute.xlu1 %2023 }
 0x8c6   :  { %v2056_v15 = vpop.permute.xlu0 %2055 }
 0x8c7   :  { %v2606_v17 = vpop.permute.xlu1 %2605  ;;  %v2068_v28 = vsel %vm131_vm0, %v2056_v15, 0.0 }
 0x8c8   :  { %v2615_v26 = vmul.f32 %v4480_v6, %v2606_v17  ;;  %v2032_v6 = vmul.f32 %v4476_v60, %v2024_v35  ;;  %v2271_v60 = vsel %vm131_vm0, %v4040_v40, 0.0  ;;  %v2352_v40 = vsel %vm131_vm0, %v4073_v19, 0.0 }
 0x8c9   :  { %v2490_v19 = vsel %vm131_vm0, %v4225_v33, 0.0  ;;  %v2493_v33 = vsel %vm131_vm0, %v4206_v8, 0.0  ;;  %v2496_v17 = vsel %vm131_vm0, %v4227_v4, 0.0 }
 0x8ca   :  { %v2619_v61 = vadd.f32 %v2615_v26, %v2595_v53  ;;  %v2036_v54 = vadd.f32 %v2032_v6, %v2012_v21  ;;  %v2577_v53 = vsel %vm131_vm0, %v4278_v10, 0.0 }
 0x8cb   :  { %v1979_v52 = vpop.permute.xlu1 %1978 }
 0x8cc   :  { %v2631_v58 = vmul.f32 %v4489_v30, %v2619_v61  ;;  %v1993_v32 = vsel %vm131_vm0, %v1979_v52, 0.0  ;;  %v2048_v0 = vmul.f32 %v4488_v43, %v2036_v54 }
 0x8cd   :  { %1994 = vadd.xlane.f32.xlu0 %v1993_v32 }
 0x8ce   :  { %2641 = vrot.lane.b32.xlu1 %v2631_v58, %s3117_s4 }
 0x8cf   :  { %v2561_v55 = vpop.permute.xlu1 %2560 }
 0x8d0   :  { %v2574_v24 = vsel %vm131_vm0, %v2561_v55, 0.0 }
 0x8d3   :  { %v2608_v5 = vpop.permute.xlu1 %2607 }
 0x8d4   :  { %v2616_v25 = vmul.f32 %v4481_v22, %v2608_v5  ;;  %v2487_v22 = vsel %vm131_vm0, %v4223_v9, 0.0  ;;  %v2355_v9 = vsel %vm131_vm0, %v4105_v63, 0.0  ;;  %v2568_v63 = vsel %vm131_vm0, %v4256_v29, 0.0 }
 0x8d6   :  { %v2620_v2 = vadd.f32 %v2616_v25, %v2596_v7 }
 0x8d7   :  { %v2054_v23 = vpop.permute.xlu1 %2053 }
 0x8d8   :  { %v2632_v59 = vmul.f32 %v4489_v30, %v2620_v2  ;;  %v2065_v13 = vsel %vm131_vm0, %v2054_v23, 0.0 }
 0x8da   :  { %2643 = vrot.lane.b32.xlu1 %v2632_v59, %s3117_s4 }
 0x8e3   :  { %2059 = vrot.lane.b32.xlu0 %v2048_v0, %s3117_s4 }
 0x8fe   :  { %2350 = vadd.xlane.f32.xlu1 %v2349_v37 }
 0x902   :  { %v1992_v45 = vpop.xlane.xlu0 %1991  ;;  %2272 = vadd.xlane.f32.xlu0 %v2271_v60  ;;  %2488 = vadd.xlane.f32.xlu1 %v2487_v22 }
 0x903   :  { %1999 = vst.msk [vmem:[#allocation2 + $0x10] sm:$0xff] %vm1996_vm11, %v1992_v45 }
 0x906   :  { %2407 = vadd.xlane.f32.xlu0 %v2406_v42  ;;  %2410 = vadd.xlane.f32.xlu1 %v2409_v1  ;;  %v2640_v36 = vpop.permute.xlu0 %2639 }
 0x907   :  { %v2652_v30 = vsel %vm131_vm0, %v2640_v36, 0.0 }
 0x908   :  { %v1989_v43 = vpop.xlane.xlu1 %1988 }
 0x909   :  { %1998 = vst.msk [vmem:[#allocation2 + $0x8] sm:$0xff] %vm1996_vm11, %v1989_v43 }
 0x90a   :  { %2353 = vadd.xlane.f32.xlu0 %v2352_v40  ;;  %2356 = vadd.xlane.f32.xlu1 %v2355_v9  ;;  %v2958_v40 = vld [vmem:[#allocation3 + $0x8] sm:$0xff] }
 0x90c   :  { %v2638_v44 = vpop.permute.xlu1 %2637 }
 0x90d   :  { %v2649_v29 = vsel %vm131_vm0, %v2638_v44, 0.0 }
 0x90e   :  { %2275 = vadd.xlane.f32.xlu0 %v2274_v56  ;;  %2413 = vadd.xlane.f32.xlu1 %v2412_v51 }
 0x910   :  { %v2058_v39 = vpop.permute.xlu1 %2057 }
 0x911   :  { %v2071_v12 = vsel %vm131_vm0, %v2058_v39, 0.0 }
 0x912   :  { %2569 = vadd.xlane.f32.xlu0 %v2568_v63  ;;  %2359 = vadd.xlane.f32.xlu1 %v2358_v31 }
 0x916   :  { %2491 = vadd.xlane.f32.xlu0 %v2490_v19  ;;  %2575 = vadd.xlane.f32.xlu1 %v2574_v24 }
 0x91a   :  { %2278 = vadd.xlane.f32.xlu0 %v2277_v48  ;;  %2066 = vadd.xlane.f32.xlu1 %v2065_v13 }
 0x91e   :  { %2572 = vadd.xlane.f32.xlu0 %v2571_v38  ;;  %2650 = vadd.xlane.f32.xlu1 %v2649_v29 }
 0x922   :  { %2494 = vadd.xlane.f32.xlu0 %v2493_v33  ;;  %2653 = vadd.xlane.f32.xlu1 %v2652_v30 }
 0x926   :  { %2416 = vadd.xlane.f32.xlu0 %v2415_v57 }
 0x92a   :  { %2069 = vadd.xlane.f32.xlu0 %v2068_v28 }
 0x92e   :  { %2072 = vadd.xlane.f32.xlu0 %v2071_v12 }
 0x940   :  { %v2642_v50 = vpop.permute.xlu1 %2641 }
 0x941   :  { %v2655_v11 = vsel %vm131_vm0, %v2642_v50, 0.0 }
 0x942   :  { %2656 = vadd.xlane.f32.xlu1 %v2655_v11 }
 0x94c   :  { %v2644_v8 = vpop.permute.xlu1 %2643 }
 0x94d   :  { %v2658_v47 = vsel %vm131_vm0, %v2644_v8, 0.0 }
 0x94e   :  { %2659 = vadd.xlane.f32.xlu1 %v2658_v47 }
 0x956   :  { %v1995_v18 = vpop.xlane.xlu0 %1994 }
 0x957   :  { %2000 = vst.msk [vmem:[#allocation2 + $0x18] sm:$0xff] %vm1996_vm11, %v1995_v18 }
 0x95a   :  { %v2060_v14 = vpop.permute.xlu0 %2059 }
 0x95b   :  { %v2074_v35 = vsel %vm131_vm0, %v2060_v14, 0.0 }
 0x95c   :  { %2075 = vadd.xlane.f32.xlu0 %v2074_v35 }
 0x960   :  { %2497 = vadd.xlane.f32.xlu0 %v2496_v17 }
 0x964   :  { %2578 = vadd.xlane.f32.xlu0 %v2577_v53 }
 0x987   :  { %v2351_v26 = vpop.xlane.xlu1 %2350 }
 0x98b   :  { %v2273_v61 = vpop.xlane.xlu0 %2272  ;;  %v2489_v52 = vpop.xlane.xlu1 %2488 }
 0x98f   :  { %v2408_v58 = vpop.xlane.xlu0 %2407  ;;  %v2411_v32 = vpop.xlane.xlu1 %2410 }
 0x993   :  { %v2354_v55 = vpop.xlane.xlu0 %2353  ;;  %v2357_v5 = vpop.xlane.xlu1 %2356 }
 0x997   :  { %v2276_v7 = vpop.xlane.xlu0 %2275  ;;  %v2414_v25 = vpop.xlane.xlu1 %2413 }
 0x99b   :  { %v2570_v2 = vpop.xlane.xlu0 %2569  ;;  %v2360_v59 = vpop.xlane.xlu1 %2359 }
 0x99f   :  { %v2492_v6 = vpop.xlane.xlu0 %2491  ;;  %v2576_v21 = vpop.xlane.xlu1 %2575 }
 0x9a3   :  { %v2279_v4 = vpop.xlane.xlu0 %2278  ;;  %v2067_v54 = vpop.xlane.xlu1 %2066 }
 0x9a4   :  { %2078 = vst.msk [vmem:[#allocation2] sm:$0xff] %vm2077_vm12, %v2067_v54 }
 0x9a5   :  { %2119 = vst.msk [vmem:[#allocation2] sm:$0xff] %vm2118_vm13, %v3898_v27 }
 0x9a6   :  { %2200 = vst.msk [vmem:[#allocation2] sm:$0xff] %vm2199_vm15, %v3998_v41 }
 0x9a7   :  { %2281 = vst.msk [vmem:[#allocation2] sm:$0xff] %vm2280_vm2, %v4084_v62  ;;  %v2573_v10 = vpop.xlane.xlu0 %2572  ;;  %v2651_v27 = vpop.xlane.xlu1 %2650 }
 0x9a8   :  { %2362 = vst.msk [vmem:[#allocation2] sm:$0xff] %vm2361_vm3, %v2351_v26 }
 0x9a9   :  { %2419 = vst.msk [vmem:[#allocation2] sm:$0xff] %vm2418_vm6, %v2408_v58 }
 0x9aa   :  { %2500 = vst.msk [vmem:[#allocation2] sm:$0xff] %vm2499_vm9, %v2489_v52 }
 0x9ab   :  { %2581 = vst.msk [vmem:[#allocation2] sm:$0xff] %vm2580_vm14, %v2570_v2  ;;  %v2495_v0 = vpop.xlane.xlu0 %2494 }
 0x9ac   :  { %2662 = vst.msk [vmem:[#allocation2] sm:$0xff] %vm2661_vm1, %v2651_v27 }
 0x9af   :  { %v2417_v41 = vpop.xlane.xlu0 %2416 }
 0x9b3   :  { %v2070_v37 = vpop.xlane.xlu0 %2069  ;;  %v2666_v15 = vld [vmem:[#allocation2] sm:$0xff] }
 0x9b4   :  { %2079 = vst.msk [vmem:[#allocation2 + $0x8] sm:$0xff] %vm2077_vm12, %v2070_v37  ;;  %2670 = vxpose.xlu0.b32.start [1/4] (short) (narrow) %v2666_v15, 16 }
 0x9b5   :  { %2120 = vst.msk [vmem:[#allocation2 + $0x8] sm:$0xff] %vm2118_vm13, %v3941_v20  ;;  %v2654_v20 = vpop.xlane.xlu1 %2653 }
 0x9b6   :  { %2201 = vst.msk [vmem:[#allocation2 + $0x8] sm:$0xff] %vm2199_vm15, %v4038_v46 }
 0x9b7   :  { %2282 = vst.msk [vmem:[#allocation2 + $0x8] sm:$0xff] %vm2280_vm2, %v2273_v61  ;;  %v2073_v62 = vpop.xlane.xlu0 %2072 }
 0x9b8   :  { %2363 = vst.msk [vmem:[#allocation2 + $0x8] sm:$0xff] %vm2361_vm3, %v2354_v55 }
 0x9b9   :  { %2080 = vst.msk [vmem:[#allocation2 + $0x10] sm:$0xff] %vm2077_vm12, %v2073_v62 }
 0x9ba   :  { %2420 = vst.msk [vmem:[#allocation2 + $0x8] sm:$0xff] %vm2418_vm6, %v2411_v32 }
 0x9bb   :  { %2121 = vst.msk [vmem:[#allocation2 + $0x10] sm:$0xff] %vm2118_vm13, %v3928_v34 }
 0x9bc   :  { %2501 = vst.msk [vmem:[#allocation2 + $0x8] sm:$0xff] %vm2499_vm9, %v2492_v6 }
 0x9bd   :  { %2202 = vst.msk [vmem:[#allocation2 + $0x10] sm:$0xff] %vm2199_vm15, %v4026_v49 }
 0x9be   :  { %2582 = vst.msk [vmem:[#allocation2 + $0x8] sm:$0xff] %vm2580_vm14, %v2573_v10 }
 0x9bf   :  { %2283 = vst.msk [vmem:[#allocation2 + $0x10] sm:$0xff] %vm2280_vm2, %v2276_v7 }
 0x9c0   :  { %2663 = vst.msk [vmem:[#allocation2 + $0x8] sm:$0xff] %vm2661_vm1, %v2654_v20 }
 0x9c1   :  { %2364 = vst.msk [vmem:[#allocation2 + $0x10] sm:$0xff] %vm2361_vm3, %v2357_v5 }
 0x9c2   :  { %2421 = vst.msk [vmem:[#allocation2 + $0x10] sm:$0xff] %vm2418_vm6, %v2414_v25 }
 0x9c3   :  { %2502 = vst.msk [vmem:[#allocation2 + $0x10] sm:$0xff] %vm2499_vm9, %v2495_v0 }
 0x9c4   :  { %2583 = vst.msk [vmem:[#allocation2 + $0x10] sm:$0xff] %vm2580_vm14, %v2576_v21 }
 0x9c7   :  { %v2667_v34 = vld [vmem:[#allocation2 + $0x8] sm:$0xff] }
 0x9c8   :  { %2671 = vxpose.xlu0.b32.cont [2/4] (short) (narrow) %v2667_v34, 16 }
 0x9cb   :  { %v2657_v46 = vpop.xlane.xlu1 %2656 }
 0x9cc   :  { %2664 = vst.msk [vmem:[#allocation2 + $0x10] sm:$0xff] %vm2661_vm1, %v2657_v46 }
 0x9d3   :  { %v2668_v49 = vld [vmem:[#allocation2 + $0x10] sm:$0xff] }
 0x9d4   :  { %2672 = vxpose.xlu0.b32.cont [3/4] (short) (narrow) %v2668_v49, 16 }
 0x9d7   :  { %v2660_v23 = vpop.xlane.xlu1 %2659 }
 0x9e5   :  { %v2076_v22 = vpop.xlane.xlu0 %2075 }
 0x9e6   :  { %2081 = vst.msk [vmem:[#allocation2 + $0x18] sm:$0xff] %vm2077_vm12, %v2076_v22 }
 0x9e7   :  { %2122 = vst.msk [vmem:[#allocation2 + $0x18] sm:$0xff] %vm2118_vm13, %v3943_v3  ;;  %v2809_v3 = vld [vmem:[%s4408_s6 + $0x3] ss:$0 sm:$0xff] }
 0x9e8   :  { %2203 = vst.msk [vmem:[#allocation2 + $0x18] sm:$0xff] %vm2199_vm15, %v4050_v16  ;;  %v2957_v16 = vld [vmem:[#allocation3] sm:$0xff]  ;;  %v2707_v56 = vmul.f32 %v2958_v40, %v2809_v3 }
 0x9e9   :  { %2284 = vst.msk [vmem:[#allocation2 + $0x18] sm:$0xff] %vm2280_vm2, %v2279_v4  ;;  %v2498_v60 = vpop.xlane.xlu0 %2497  ;;  %v2706_v1 = vmul.f32 %v2957_v16, %v2809_v3 }
 0x9ea   :  { %2365 = vst.msk [vmem:[#allocation2 + $0x18] sm:$0xff] %vm2361_vm3, %v2360_v59 }
 0x9eb   :  { %2422 = vst.msk [vmem:[#allocation2 + $0x18] sm:$0xff] %vm2418_vm6, %v2417_v41 }
 0x9ec   :  { %2503 = vst.msk [vmem:[#allocation2 + $0x18] sm:$0xff] %vm2499_vm9, %v2498_v60 }
 0x9ed   :  { %v2579_v45 = vpop.xlane.xlu0 %2578 }
 0x9ee   :  { %2584 = vst.msk [vmem:[#allocation2 + $0x18] sm:$0xff] %vm2580_vm14, %v2579_v45 }
 0x9ef   :  { %2665 = vst.msk [vmem:[#allocation2 + $0x18] sm:$0xff] %vm2661_vm1, %v2660_v23 }
 0x9f6   :  { %v2669_v42 = vld [vmem:[#allocation2 + $0x18] sm:$0xff] }
 0x9f7   :  { %2673 = vxpose.xlu0.b32.end [4/4] (short) (narrow) %v2669_v42, 16 }
 0xa67   :  { %v2686_v43 = vpop.trf.xlu0 }
 0xa68   :  { %v2708_v9 = vadd.f32 %v2706_v1, %v2686_v43 }
 0xa6a   :  { %2710 = vst.msk [vmem:[#allocation14] sm:$0xff] %vm131_vm0, %v2708_v9 }
 0xa6b   :  { %v2687_v51 = vpop.trf.xlu0 }
 0xa6c   :  { %v2709_v31 = vadd.f32 %v2707_v56, %v2687_v51 }
 0xa6e   :  { %2711 = vst.msk [vmem:[#allocation14 + $0x8] sm:$0xff] %vm131_vm0, %v2709_v31 }
 0xa6f   :  { %3090 = shalt.err (!%p3087_p6)
}
 0xa70   :  { %2723 = dma.vmem_to_hbm [thread:$0]  %s2718_s17, 256, %s4409_s7, [#allocation5], %s3111_s29, %s3111_s29, %s3112_s30  }
 0xa71   :  { %3107 = dma.done.wait [#allocation5], 256  }
 0xa72   :  { %3108 = vsyncadd [#allocation5], 4294967040 }
 0xa73   :  { %2727 = vsyncpa [#allocation4], 1 }
 0xa74   :  { %2728 = vsyncpa [#allocation7], 1 }
 0xa75   :  { %2729 = vsyncpa [#allocation10], 1 }
 0xa76   :  { %2730 = vsyncpa [#allocation13], 1 }
 0xa77   :  { %2731 = vsyncpa [#allocation5], 1 }

</bundles_post_ra>
